<compile_context>
chip_gen: v7x
topology: tpu7x:2x2x1
jax: 0.10.0
libtpu: 0.0.40
codegen_flags: <defaults>
</compile_context>

<pallas_src>
import functools

import jax
import jax.numpy as jnp
from jax.experimental import pallas as pl
from jax.experimental.pallas import tpu as pltpu

NUM_CLASSES = 8
OUT_CHANNELS = 16


# ----------------------------------------------------------------------------
# Pallas kernels: fused (im2col-)matmul + bias + activation
# ----------------------------------------------------------------------------
def _mm_act_kernel(p_ref, w_ref, b_ref, o_ref, *, act):
    # p_ref: (M, K) bf16 patches     w_ref: (K, Cout) bf16
    # b_ref: (1, Cout) f32           o_ref: (M, Cout) f32
    acc = jnp.dot(p_ref[...], w_ref[...], preferred_element_type=jnp.float32)
    acc = acc + b_ref[...]
    if act == "relu":
        acc = jnp.maximum(acc, 0.0)
    elif act == "exp":
        acc = jnp.exp(acc)
    o_ref[...] = acc.astype(o_ref.dtype)


def _head_kernel(ct_ref, bt_ref, wcc_ref, bcc_ref, wbx_ref, bbx_ref,
                 cc_ref, bx_ref):
    # Fused prediction head over BOTH pyramid levels:
    #   cls_logits(8) + centerness(1) on the cls-tower rows   -> cc_ref (M, 9)
    #   bbox_pred(4) with exp on the bbox-tower rows          -> bx_ref (M, 4)
    cc = jnp.dot(ct_ref[...], wcc_ref[...], preferred_element_type=jnp.float32)
    cc_ref[...] = (cc + bcc_ref[...]).astype(cc_ref.dtype)
    bx = jnp.dot(bt_ref[...], wbx_ref[...], preferred_element_type=jnp.float32)
    bx_ref[...] = jnp.exp(bx + bbx_ref[...]).astype(bx_ref.dtype)


def fused_matmul(patches, w, b, act):
    """Single-block pallas_call: (M,K)@(K,Cout) + bias + activation."""
    M, K = patches.shape
    Cout = w.shape[1]
    return pl.pallas_call(
        functools.partial(_mm_act_kernel, act=act),
        out_shape=jax.ShapeDtypeStruct((M, Cout), jnp.float32),
        grid_spec=pltpu.PrefetchScalarGridSpec(
            num_scalar_prefetch=0,
            grid=(1,),
            in_specs=[
                pl.BlockSpec((M, K), lambda i: (0, 0)),
                pl.BlockSpec((K, Cout), lambda i: (0, 0)),
                pl.BlockSpec((1, Cout), lambda i: (0, 0)),
            ],
            out_specs=pl.BlockSpec((M, Cout), lambda i: (0, 0)),
        ),
        compiler_params=pltpu.CompilerParams(
            dimension_semantics=("arbitrary",)),
    )(patches, w, b)


def head_call(ct_patches, bt_patches, w_cc, b_cc, w_bx, b_bx):
    """One pallas_call for all three prediction branches (both levels)."""
    M, K = ct_patches.shape
    C1 = w_cc.shape[1]  # 9  (8 cls + 1 centerness)
    C2 = w_bx.shape[1]  # 4  (bbox regression, exp)
    return pl.pallas_call(
        _head_kernel,
        out_shape=(jax.ShapeDtypeStruct((M, C1), jnp.float32),
                   jax.ShapeDtypeStruct((M, C2), jnp.float32)),
        grid_spec=pltpu.PrefetchScalarGridSpec(
            num_scalar_prefetch=0,
            grid=(1,),
            in_specs=[
                pl.BlockSpec((M, K), lambda i: (0, 0)),
                pl.BlockSpec((M, K), lambda i: (0, 0)),
                pl.BlockSpec((K, C1), lambda i: (0, 0)),
                pl.BlockSpec((1, C1), lambda i: (0, 0)),
                pl.BlockSpec((K, C2), lambda i: (0, 0)),
                pl.BlockSpec((1, C2), lambda i: (0, 0)),
            ],
            out_specs=(pl.BlockSpec((M, C1), lambda i: (0, 0)),
                       pl.BlockSpec((M, C2), lambda i: (0, 0))),
        ),
        compiler_params=pltpu.CompilerParams(
            dimension_semantics=("arbitrary",)),
    )(ct_patches, bt_patches, w_cc, b_cc, w_bx, b_bx)


# ----------------------------------------------------------------------------
# Glue: im2col (data rearrangement only), locations, params
# ----------------------------------------------------------------------------
def _im2col(x_nhwc, stride=1):
    """(N,H,W,C) -> (N*Ho*Wo, 9*C) bf16 patches for a 3x3/pad=1 conv.

    stride=2 keeps exactly the positions a stride-1 conv followed by
    [:, ::2, ::2, :] would keep (bit-identical result, 4x fewer rows)."""
    N, H, W, C = x_nhwc.shape
    xp = jnp.pad(x_nhwc, ((0, 0), (1, 1), (1, 1), (0, 0)))
    cols = []
    for kh in range(3):
        for kw in range(3):
            cols.append(xp[:, kh:kh + H:stride, kw:kw + W:stride, :])
    Ho, Wo = cols[0].shape[1], cols[0].shape[2]
    patches = jnp.stack(cols, axis=3)                 # (N, Ho, Wo, 9, C)
    return patches.reshape(N * Ho * Wo, 9 * C).astype(jnp.bfloat16)


def _init_conv(key, cin, cout, scale=0.1):
    w = jax.random.normal(key, (3, 3, cin, cout), jnp.float32) * scale
    b = jnp.zeros((cout,), jnp.float32)
    return w, b


def init_fcos_params(key):
    keys = jax.random.split(key, 8)
    stem_w, stem_b = _init_conv(keys[0], 3, 8)
    c2_w, c2_b = _init_conv(keys[1], 8, OUT_CHANNELS)
    c3_w, c3_b = _init_conv(keys[2], OUT_CHANNELS, OUT_CHANNELS)
    ct_w, ct_b = _init_conv(keys[3], OUT_CHANNELS, OUT_CHANNELS)   # cls_tower
    bt_w, bt_b = _init_conv(keys[4], OUT_CHANNELS, OUT_CHANNELS)   # bbox_tower
    cl_w, cl_b = _init_conv(keys[5], OUT_CHANNELS, NUM_CLASSES)    # cls_logits
    bp_w, bp_b = _init_conv(keys[6], OUT_CHANNELS, 4)              # bbox_pred
    cn_w, cn_b = _init_conv(keys[7], OUT_CHANNELS, 1)              # centerness

    def fw(w):  # (3,3,Cin,Cout) -> (9*Cin, Cout) bf16; matches im2col (kh,kw,c)
        return w.reshape(-1, w.shape[-1]).astype(jnp.bfloat16)

    def fb(*bs):  # fuse + keep bias in f32 (added on the f32 accumulator)
        return jnp.concatenate(bs).reshape(1, -1).astype(jnp.float32)

    return {
        "stem_w": fw(stem_w), "stem_b": fb(stem_b),
        "c2_w": fw(c2_w), "c2_b": fb(c2_b),
        "c3_w": fw(c3_w), "c3_b": fb(c3_b),
        # fused cls_tower + bbox_tower  (Cout = 32)
        "tower_w": jnp.concatenate([fw(ct_w), fw(bt_w)], axis=1),
        "tower_b": fb(ct_b, bt_b),
        # fused cls_logits + centerness (Cout = 9)
        "cls_ctr_w": jnp.concatenate([fw(cl_w), fw(cn_w)], axis=1),
        "cls_ctr_b": fb(cl_b, cn_b),
        "box_w": fw(bp_w), "box_b": fb(bp_b),
    }


def compute_locations(H, W, stride):
    # FCOS location grid: centers of stride cells, order (x, y), shape (H*W, 2)
    shifts_x = jnp.arange(W, dtype=jnp.float32) * stride + stride // 2
    shifts_y = jnp.arange(H, dtype=jnp.float32) * stride + stride // 2
    sy, sx = jnp.meshgrid(shifts_y, shifts_x, indexing="ij")
    return jnp.stack([sx.reshape(-1), sy.reshape(-1)], axis=1)


# ----------------------------------------------------------------------------
# FCOS forward
# ----------------------------------------------------------------------------
def fcos_forward(params, x_nchw):
    x = jnp.transpose(x_nchw, (0, 2, 3, 1)).astype(jnp.float32)   # NCHW -> NHWC
    N, H, W, _ = x.shape

    # ---- backbone ----
    H1, W1 = H // 2, W // 2
    stem = fused_matmul(_im2col(x, stride=2),
                        params["stem_w"], params["stem_b"], "relu")
    h = stem.reshape(N, H1, W1, -1)                                # (N,8,8,8)

    p3 = fused_matmul(_im2col(h), params["c2_w"], params["c2_b"], "relu")
    p3 = p3.reshape(N, H1, W1, OUT_CHANNELS)                       # level 0, stride 2

    h2 = p3[:, ::2, ::2, :]
    H2, W2 = H1 // 2, W1 // 2
    p4 = fused_matmul(_im2col(h2), params["c3_w"], params["c3_b"], "relu")
    p4 = p4.reshape(N, H2, W2, OUT_CHANNELS)                       # level 1, stride 4

    rows3 = N * H1 * W1
    rows4 = N * H2 * W2

    # ---- shared RPN head: both levels concatenated along the row axis ----
    feat_patches = jnp.concatenate([_im2col(p3), _im2col(p4)], axis=0)
    tower = fused_matmul(feat_patches, params["tower_w"], params["tower_b"],
                         "relu")                                   # (rows, 32)
    ct_rows = tower[:, :OUT_CHANNELS]
    bt_rows = tower[:, OUT_CHANNELS:]

    ct3 = ct_rows[:rows3].reshape(N, H1, W1, OUT_CHANNELS)
    ct4 = ct_rows[rows3:].reshape(N, H2, W2, OUT_CHANNELS)
    bt3 = bt_rows[:rows3].reshape(N, H1, W1, OUT_CHANNELS)
    bt4 = bt_rows[rows3:].reshape(N, H2, W2, OUT_CHANNELS)

    ct_patches = jnp.concatenate([_im2col(ct3), _im2col(ct4)], axis=0)
    bt_patches = jnp.concatenate([_im2col(bt3), _im2col(bt4)], axis=0)

    cc, bx = head_call(ct_patches, bt_patches,
                       params["cls_ctr_w"], params["cls_ctr_b"],
                       params["box_w"], params["box_b"])           # (rows,9),(rows,4)

    def to_nchw(rows, h, w, c):
        return jnp.transpose(rows.reshape(N, h, w, c), (0, 3, 1, 2))

    cls_out = [to_nchw(cc[:rows3, :NUM_CLASSES], H1, W1, NUM_CLASSES),
               to_nchw(cc[rows3:, :NUM_CLASSES], H2, W2, NUM_CLASSES)]
    ctr_out = [to_nchw(cc[:rows3, NUM_CLASSES:], H1, W1, 1),
               to_nchw(cc[rows3:, NUM_CLASSES:], H2, W2, 1)]
    box_out = [to_nchw(bx[:rows3], H1, W1, 4),
               to_nchw(bx[rows3:], H2, W2, 4)]
    locs_out = [compute_locations(H1, W1, 2), compute_locations(H2, W2, 4)]
    return cls_out, box_out, ctr_out, locs_out


if __name__ == "__main__":
    key = jax.random.PRNGKey(0)
    k_params, k_x = jax.random.split(key)

    params = init_fcos_params(k_params)
    x = jax.random.normal(k_x, (2, 3, 16, 16), jnp.float32)   # NCHW input

    fcos_fwd = jax.jit(fcos_forward)
    cls, box, centerness, locs = fcos_fwd(params, x)
    jax.block_until_ready((cls, box, centerness, locs))

    # light sanity checks on shapes
    assert cls[0].shape == (2, NUM_CLASSES, 8, 8)
    assert cls[1].shape == (2, NUM_CLASSES, 4, 4)
    assert box[0].shape == (2, 4, 8, 8)
    assert centerness[1].shape == (2, 1, 4, 4)
    assert locs[0].shape == (64, 2)
    assert locs[1].shape == (16, 2)

    print("KERNEL_OK")
</pallas_src>

<mosaic_0001>
module attributes {stable_mosaic.version = 11 : i64} {
  func.func @_mm_act_kernel(%arg0: i32, %arg1: memref<128x27xbf16, #tpu.memory_space<vmem>>, %arg2: memref<27x8xbf16, #tpu.memory_space<vmem>>, %arg3: memref<1x8xf32, #tpu.memory_space<vmem>>, %arg4: memref<128x8xf32, #tpu.memory_space<vmem>>) attributes {dimension_semantics = [#tpu.dimension_semantics<arbitrary>], iteration_bounds = array<i64: 1>, scalar_prefetch = 0 : i64, scratch_operands = 0 : i64, tpu.core_type = #tpu.core_type<tc>, window_params = [{pipeline_mode = #tpu.pipeline_mode<synchronous>, transform_indices = @transform_0, window_bounds = array<i64: 128, 27>}, {pipeline_mode = #tpu.pipeline_mode<synchronous>, transform_indices = @transform_1, window_bounds = array<i64: 27, 8>}, {pipeline_mode = #tpu.pipeline_mode<synchronous>, transform_indices = @transform_2, window_bounds = array<i64: 1, 8>}, {pipeline_mode = #tpu.pipeline_mode<synchronous>, transform_indices = @transform_3, window_bounds = array<i64: 128, 8>}]} {
    %c0 = arith.constant 0 : index
    %c0_0 = arith.constant 0 : index
    %0 = vector.load %arg1[%c0, %c0_0] : memref<128x27xbf16, #tpu.memory_space<vmem>>, vector<128x27xbf16>
    %c0_1 = arith.constant 0 : index
    %c0_2 = arith.constant 0 : index
    %1 = vector.load %arg2[%c0_1, %c0_2] : memref<27x8xbf16, #tpu.memory_space<vmem>>, vector<27x8xbf16>
    %cst = arith.constant dense<0.000000e+00> : vector<128x8xf32>
    %2 = tpu.matmul %0, %1, %cst {dimension_numbers = #tpu.dot_dimension_numbers<[1], [0], [0], [1], [0, 0, 1, 1], [], []>} : vector<128x27xbf16>, vector<27x8xbf16>, vector<128x8xf32> -> vector<128x8xf32>
    %c0_3 = arith.constant 0 : index
    %c0_4 = arith.constant 0 : index
    %3 = vector.load %arg3[%c0_3, %c0_4] : memref<1x8xf32, #tpu.memory_space<vmem>>, vector<1x8xf32>
    %4 = vector.broadcast %3 : vector<1x8xf32> to vector<128x8xf32>
    %5 = arith.addf %2, %4 : vector<128x8xf32>
    %cst_5 = arith.constant 0.000000e+00 : f32
    %6 = vector.broadcast %cst_5 : f32 to vector<128x8xf32>
    %7 = arith.maximumf %5, %6 : vector<128x8xf32>
    %c0_6 = arith.constant 0 : index
    %c0_7 = arith.constant 0 : index
    %8 = vector.load %arg4[%c0_6, %c0_7] : memref<128x8xf32, #tpu.memory_space<vmem>>, vector<128x8xf32>
    tpu.vector_store %arg4[%c0_6, %c0_7], %7 {strides = array<i32>} : memref<128x8xf32, #tpu.memory_space<vmem>>, vector<128x8xf32>,
    return
  }
  func.func @transform_0(%arg0: i32) -> (i32, i32) {
    %c0_i32 = arith.constant 0 : i32
    %c0_i32_0 = arith.constant 0 : i32
    %c0_i32_1 = arith.constant 0 : i32
    return %c0_i32, %c0_i32_0 : i32, i32
  }
  func.func @transform_1(%arg0: i32) -> (i32, i32) {
    %c0_i32 = arith.constant 0 : i32
    %c0_i32_0 = arith.constant 0 : i32
    %c0_i32_1 = arith.constant 0 : i32
    return %c0_i32, %c0_i32_0 : i32, i32
  }
  func.func @transform_2(%arg0: i32) -> (i32, i32) {
    %c0_i32 = arith.constant 0 : i32
    %c0_i32_0 = arith.constant 0 : i32
    %c0_i32_1 = arith.constant 0 : i32
    return %c0_i32, %c0_i32_0 : i32, i32
  }
  func.func @transform_3(%arg0: i32) -> (i32, i32) {
    %c0_i32 = arith.constant 0 : i32
    %c0_i32_0 = arith.constant 0 : i32
    %c0_i32_1 = arith.constant 0 : i32
    return %c0_i32, %c0_i32_0 : i32, i32
  }
}

module attributes {stable_mosaic.version = 11 : i64} {
  func.func @_mm_act_kernel(%arg0: i32, %arg1: memref<128x72xbf16, #tpu.memory_space<vmem>>, %arg2: memref<72x16xbf16, #tpu.memory_space<vmem>>, %arg3: memref<1x16xf32, #tpu.memory_space<vmem>>, %arg4: memref<128x16xf32, #tpu.memory_space<vmem>>) attributes {dimension_semantics = [#tpu.dimension_semantics<arbitrary>], iteration_bounds = array<i64: 1>, scalar_prefetch = 0 : i64, scratch_operands = 0 : i64, tpu.core_type = #tpu.core_type<tc>, window_params = [{pipeline_mode = #tpu.pipeline_mode<synchronous>, transform_indices = @transform_0, window_bounds = array<i64: 128, 72>}, {pipeline_mode = #tpu.pipeline_mode<synchronous>, transform_indices = @transform_1, window_bounds = array<i64: 72, 16>}, {pipeline_mode = #tpu.pipeline_mode<synchronous>, transform_indices = @transform_2, window_bounds = array<i64: 1, 16>}, {pipeline_mode = #tpu.pipeline_mode<synchronous>, transform_indices = @transform_3, window_bounds = array<i64: 128, 16>}]} {
    %c0 = arith.constant 0 : index
    %c0_0 = arith.constant 0 : index
    %0 = vector.load %arg1[%c0, %c0_0] : memref<128x72xbf16, #tpu.memory_space<vmem>>, vector<128x72xbf16>
    %c0_1 = arith.constant 0 : index
    %c0_2 = arith.constant 0 : index
    %1 = vector.load %arg2[%c0_1, %c0_2] : memref<72x16xbf16, #tpu.memory_space<vmem>>, vector<72x16xbf16>
    %cst = arith.constant dense<0.000000e+00> : vector<128x16xf32>
    %2 = tpu.matmul %0, %1, %cst {dimension_numbers = #tpu.dot_dimension_numbers<[1], [0], [0], [1], [0, 0, 1, 1], [], []>} : vector<128x72xbf16>, vector<72x16xbf16>, vector<128x16xf32> -> vector<128x16xf32>
    %c0_3 = arith.constant 0 : index
    %c0_4 = arith.constant 0 : index
    %3 = vector.load %arg3[%c0_3, %c0_4] : memref<1x16xf32, #tpu.memory_space<vmem>>, vector<1x16xf32>
    %4 = vector.broadcast %3 : vector<1x16xf32> to vector<128x16xf32>
    %5 = arith.addf %2, %4 : vector<128x16xf32>
    %cst_5 = arith.constant 0.000000e+00 : f32
    %6 = vector.broadcast %cst_5 : f32 to vector<128x16xf32>
    %7 = arith.maximumf %5, %6 : vector<128x16xf32>
    %c0_6 = arith.constant 0 : index
    %c0_7 = arith.constant 0 : index
    %8 = vector.load %arg4[%c0_6, %c0_7] : memref<128x16xf32, #tpu.memory_space<vmem>>, vector<128x16xf32>
    tpu.vector_store %arg4[%c0_6, %c0_7], %7 {strides = array<i32>} : memref<128x16xf32, #tpu.memory_space<vmem>>, vector<128x16xf32>,
    return
  }
  func.func @transform_0(%arg0: i32) -> (i32, i32) {
    %c0_i32 = arith.constant 0 : i32
    %c0_i32_0 = arith.constant 0 : i32
    %c0_i32_1 = arith.constant 0 : i32
    return %c0_i32, %c0_i32_0 : i32, i32
  }
  func.func @transform_1(%arg0: i32) -> (i32, i32) {
    %c0_i32 = arith.constant 0 : i32
    %c0_i32_0 = arith.constant 0 : i32
    %c0_i32_1 = arith.constant 0 : i32
    return %c0_i32, %c0_i32_0 : i32, i32
  }
  func.func @transform_2(%arg0: i32) -> (i32, i32) {
    %c0_i32 = arith.constant 0 : i32
    %c0_i32_0 = arith.constant 0 : i32
    %c0_i32_1 = arith.constant 0 : i32
    return %c0_i32, %c0_i32_0 : i32, i32
  }
  func.func @transform_3(%arg0: i32) -> (i32, i32) {
    %c0_i32 = arith.constant 0 : i32
    %c0_i32_0 = arith.constant 0 : i32
    %c0_i32_1 = arith.constant 0 : i32
    return %c0_i32, %c0_i32_0 : i32, i32
  }
}

module attributes {stable_mosaic.version = 11 : i64} {
  func.func @_mm_act_kernel(%arg0: i32, %arg1: memref<32x144xbf16, #tpu.memory_space<vmem>>, %arg2: memref<144x16xbf16, #tpu.memory_space<vmem>>, %arg3: memref<1x16xf32, #tpu.memory_space<vmem>>, %arg4: memref<32x16xf32, #tpu.memory_space<vmem>>) attributes {dimension_semantics = [#tpu.dimension_semantics<arbitrary>], iteration_bounds = array<i64: 1>, scalar_prefetch = 0 : i64, scratch_operands = 0 : i64, tpu.core_type = #tpu.core_type<tc>, window_params = [{pipeline_mode = #tpu.pipeline_mode<synchronous>, transform_indices = @transform_0, window_bounds = array<i64: 32, 144>}, {pipeline_mode = #tpu.pipeline_mode<synchronous>, transform_indices = @transform_1, window_bounds = array<i64: 144, 16>}, {pipeline_mode = #tpu.pipeline_mode<synchronous>, transform_indices = @transform_2, window_bounds = array<i64: 1, 16>}, {pipeline_mode = #tpu.pipeline_mode<synchronous>, transform_indices = @transform_3, window_bounds = array<i64: 32, 16>}]} {
    %c0 = arith.constant 0 : index
    %c0_0 = arith.constant 0 : index
    %0 = vector.load %arg1[%c0, %c0_0] : memref<32x144xbf16, #tpu.memory_space<vmem>>, vector<32x144xbf16>
    %c0_1 = arith.constant 0 : index
    %c0_2 = arith.constant 0 : index
    %1 = vector.load %arg2[%c0_1, %c0_2] : memref<144x16xbf16, #tpu.memory_space<vmem>>, vector<144x16xbf16>
    %cst = arith.constant dense<0.000000e+00> : vector<32x16xf32>
    %2 = tpu.matmul %0, %1, %cst {dimension_numbers = #tpu.dot_dimension_numbers<[1], [0], [0], [1], [0, 0, 1, 1], [], []>} : vector<32x144xbf16>, vector<144x16xbf16>, vector<32x16xf32> -> vector<32x16xf32>
    %c0_3 = arith.constant 0 : index
    %c0_4 = arith.constant 0 : index
    %3 = vector.load %arg3[%c0_3, %c0_4] : memref<1x16xf32, #tpu.memory_space<vmem>>, vector<1x16xf32>
    %4 = vector.broadcast %3 : vector<1x16xf32> to vector<32x16xf32>
    %5 = arith.addf %2, %4 : vector<32x16xf32>
    %cst_5 = arith.constant 0.000000e+00 : f32
    %6 = vector.broadcast %cst_5 : f32 to vector<32x16xf32>
    %7 = arith.maximumf %5, %6 : vector<32x16xf32>
    %c0_6 = arith.constant 0 : index
    %c0_7 = arith.constant 0 : index
    %8 = vector.load %arg4[%c0_6, %c0_7] : memref<32x16xf32, #tpu.memory_space<vmem>>, vector<32x16xf32>
    tpu.vector_store %arg4[%c0_6, %c0_7], %7 {strides = array<i32>} : memref<32x16xf32, #tpu.memory_space<vmem>>, vector<32x16xf32>,
    return
  }
  func.func @transform_0(%arg0: i32) -> (i32, i32) {
    %c0_i32 = arith.constant 0 : i32
    %c0_i32_0 = arith.constant 0 : i32
    %c0_i32_1 = arith.constant 0 : i32
    return %c0_i32, %c0_i32_0 : i32, i32
  }
  func.func @transform_1(%arg0: i32) -> (i32, i32) {
    %c0_i32 = arith.constant 0 : i32
    %c0_i32_0 = arith.constant 0 : i32
    %c0_i32_1 = arith.constant 0 : i32
    return %c0_i32, %c0_i32_0 : i32, i32
  }
  func.func @transform_2(%arg0: i32) -> (i32, i32) {
    %c0_i32 = arith.constant 0 : i32
    %c0_i32_0 = arith.constant 0 : i32
    %c0_i32_1 = arith.constant 0 : i32
    return %c0_i32, %c0_i32_0 : i32, i32
  }
  func.func @transform_3(%arg0: i32) -> (i32, i32) {
    %c0_i32 = arith.constant 0 : i32
    %c0_i32_0 = arith.constant 0 : i32
    %c0_i32_1 = arith.constant 0 : i32
    return %c0_i32, %c0_i32_0 : i32, i32
  }
}

module attributes {stable_mosaic.version = 11 : i64} {
  func.func @_mm_act_kernel(%arg0: i32, %arg1: memref<160x144xbf16, #tpu.memory_space<vmem>>, %arg2: memref<144x32xbf16, #tpu.memory_space<vmem>>, %arg3: memref<1x32xf32, #tpu.memory_space<vmem>>, %arg4: memref<160x32xf32, #tpu.memory_space<vmem>>) attributes {dimension_semantics = [#tpu.dimension_semantics<arbitrary>], iteration_bounds = array<i64: 1>, scalar_prefetch = 0 : i64, scratch_operands = 0 : i64, tpu.core_type = #tpu.core_type<tc>, window_params = [{pipeline_mode = #tpu.pipeline_mode<synchronous>, transform_indices = @transform_0, window_bounds = array<i64: 160, 144>}, {pipeline_mode = #tpu.pipeline_mode<synchronous>, transform_indices = @transform_1, window_bounds = array<i64: 144, 32>}, {pipeline_mode = #tpu.pipeline_mode<synchronous>, transform_indices = @transform_2, window_bounds = array<i64: 1, 32>}, {pipeline_mode = #tpu.pipeline_mode<synchronous>, transform_indices = @transform_3, window_bounds = array<i64: 160, 32>}]} {
    %c0 = arith.constant 0 : index
    %c0_0 = arith.constant 0 : index
    %0 = vector.load %arg1[%c0, %c0_0] : memref<160x144xbf16, #tpu.memory_space<vmem>>, vector<160x144xbf16>
    %c0_1 = arith.constant 0 : index
    %c0_2 = arith.constant 0 : index
    %1 = vector.load %arg2[%c0_1, %c0_2] : memref<144x32xbf16, #tpu.memory_space<vmem>>, vector<144x32xbf16>
    %cst = arith.constant dense<0.000000e+00> : vector<160x32xf32>
    %2 = tpu.matmul %0, %1, %cst {dimension_numbers = #tpu.dot_dimension_numbers<[1], [0], [0], [1], [0, 0, 1, 1], [], []>} : vector<160x144xbf16>, vector<144x32xbf16>, vector<160x32xf32> -> vector<160x32xf32>
    %c0_3 = arith.constant 0 : index
    %c0_4 = arith.constant 0 : index
    %3 = vector.load %arg3[%c0_3, %c0_4] : memref<1x32xf32, #tpu.memory_space<vmem>>, vector<1x32xf32>
    %4 = vector.broadcast %3 : vector<1x32xf32> to vector<160x32xf32>
    %5 = arith.addf %2, %4 : vector<160x32xf32>
    %cst_5 = arith.constant 0.000000e+00 : f32
    %6 = vector.broadcast %cst_5 : f32 to vector<160x32xf32>
    %7 = arith.maximumf %5, %6 : vector<160x32xf32>
    %c0_6 = arith.constant 0 : index
    %c0_7 = arith.constant 0 : index
    %8 = vector.load %arg4[%c0_6, %c0_7] : memref<160x32xf32, #tpu.memory_space<vmem>>, vector<160x32xf32>
    tpu.vector_store %arg4[%c0_6, %c0_7], %7 {strides = array<i32>} : memref<160x32xf32, #tpu.memory_space<vmem>>, vector<160x32xf32>,
    return
  }
  func.func @transform_0(%arg0: i32) -> (i32, i32) {
    %c0_i32 = arith.constant 0 : i32
    %c0_i32_0 = arith.constant 0 : i32
    %c0_i32_1 = arith.constant 0 : i32
    return %c0_i32, %c0_i32_0 : i32, i32
  }
  func.func @transform_1(%arg0: i32) -> (i32, i32) {
    %c0_i32 = arith.constant 0 : i32
    %c0_i32_0 = arith.constant 0 : i32
    %c0_i32_1 = arith.constant 0 : i32
    return %c0_i32, %c0_i32_0 : i32, i32
  }
  func.func @transform_2(%arg0: i32) -> (i32, i32) {
    %c0_i32 = arith.constant 0 : i32
    %c0_i32_0 = arith.constant 0 : i32
    %c0_i32_1 = arith.constant 0 : i32
    return %c0_i32, %c0_i32_0 : i32, i32
  }
  func.func @transform_3(%arg0: i32) -> (i32, i32) {
    %c0_i32 = arith.constant 0 : i32
    %c0_i32_0 = arith.constant 0 : i32
    %c0_i32_1 = arith.constant 0 : i32
    return %c0_i32, %c0_i32_0 : i32, i32
  }
}

module attributes {stable_mosaic.version = 11 : i64} {
  func.func @_head_kernel(%arg0: i32, %arg1: memref<160x144xbf16, #tpu.memory_space<vmem>>, %arg2: memref<160x144xbf16, #tpu.memory_space<vmem>>, %arg3: memref<144x9xbf16, #tpu.memory_space<vmem>>, %arg4: memref<1x9xf32, #tpu.memory_space<vmem>>, %arg5: memref<144x4xbf16, #tpu.memory_space<vmem>>, %arg6: memref<1x4xf32, #tpu.memory_space<vmem>>, %arg7: memref<160x9xf32, #tpu.memory_space<vmem>>, %arg8: memref<160x4xf32, #tpu.memory_space<vmem>>) attributes {dimension_semantics = [#tpu.dimension_semantics<arbitrary>], iteration_bounds = array<i64: 1>, scalar_prefetch = 0 : i64, scratch_operands = 0 : i64, tpu.core_type = #tpu.core_type<tc>, window_params = [{pipeline_mode = #tpu.pipeline_mode<synchronous>, transform_indices = @transform_0, window_bounds = array<i64: 160, 144>}, {pipeline_mode = #tpu.pipeline_mode<synchronous>, transform_indices = @transform_1, window_bounds = array<i64: 160, 144>}, {pipeline_mode = #tpu.pipeline_mode<synchronous>, transform_indices = @transform_2, window_bounds = array<i64: 144, 9>}, {pipeline_mode = #tpu.pipeline_mode<synchronous>, transform_indices = @transform_3, window_bounds = array<i64: 1, 9>}, {pipeline_mode = #tpu.pipeline_mode<synchronous>, transform_indices = @transform_4, window_bounds = array<i64: 144, 4>}, {pipeline_mode = #tpu.pipeline_mode<synchronous>, transform_indices = @transform_5, window_bounds = array<i64: 1, 4>}, {pipeline_mode = #tpu.pipeline_mode<synchronous>, transform_indices = @transform_6, window_bounds = array<i64: 160, 9>}, {pipeline_mode = #tpu.pipeline_mode<synchronous>, transform_indices = @transform_7, window_bounds = array<i64: 160, 4>}]} {
    %c0 = arith.constant 0 : index
    %c0_0 = arith.constant 0 : index
    %0 = vector.load %arg1[%c0, %c0_0] : memref<160x144xbf16, #tpu.memory_space<vmem>>, vector<160x144xbf16>
    %c0_1 = arith.constant 0 : index
    %c0_2 = arith.constant 0 : index
    %1 = vector.load %arg3[%c0_1, %c0_2] : memref<144x9xbf16, #tpu.memory_space<vmem>>, vector<144x9xbf16>
    %cst = arith.constant dense<0.000000e+00> : vector<160x9xf32>
    %2 = tpu.matmul %0, %1, %cst {dimension_numbers = #tpu.dot_dimension_numbers<[1], [0], [0], [1], [0, 0, 1, 1], [], []>} : vector<160x144xbf16>, vector<144x9xbf16>, vector<160x9xf32> -> vector<160x9xf32>
    %c0_3 = arith.constant 0 : index
    %c0_4 = arith.constant 0 : index
    %3 = vector.load %arg4[%c0_3, %c0_4] : memref<1x9xf32, #tpu.memory_space<vmem>>, vector<1x9xf32>
    %4 = vector.broadcast %3 : vector<1x9xf32> to vector<160x9xf32>
    %5 = arith.addf %2, %4 : vector<160x9xf32>
    %c0_5 = arith.constant 0 : index
    %c0_6 = arith.constant 0 : index
    %6 = vector.load %arg7[%c0_5, %c0_6] : memref<160x9xf32, #tpu.memory_space<vmem>>, vector<160x9xf32>
    tpu.vector_store %arg7[%c0_5, %c0_6], %5 {strides = array<i32>} : memref<160x9xf32, #tpu.memory_space<vmem>>, vector<160x9xf32>,
    %c0_7 = arith.constant 0 : index
    %c0_8 = arith.constant 0 : index
    %7 = vector.load %arg2[%c0_7, %c0_8] : memref<160x144xbf16, #tpu.memory_space<vmem>>, vector<160x144xbf16>
    %c0_9 = arith.constant 0 : index
    %c0_10 = arith.constant 0 : index
    %8 = vector.load %arg5[%c0_9, %c0_10] : memref<144x4xbf16, #tpu.memory_space<vmem>>, vector<144x4xbf16>
    %cst_11 = arith.constant dense<0.000000e+00> : vector<160x4xf32>
    %9 = tpu.matmul %7, %8, %cst_11 {dimension_numbers = #tpu.dot_dimension_numbers<[1], [0], [0], [1], [0, 0, 1, 1], [], []>} : vector<160x144xbf16>, vector<144x4xbf16>, vector<160x4xf32> -> vector<160x4xf32>
    %c0_12 = arith.constant 0 : index
    %c0_13 = arith.constant 0 : index
    %10 = vector.load %arg6[%c0_12, %c0_13] : memref<1x4xf32, #tpu.memory_space<vmem>>, vector<1x4xf32>
    %11 = vector.broadcast %10 : vector<1x4xf32> to vector<160x4xf32>
    %12 = arith.addf %9, %11 : vector<160x4xf32>
    %13 = math.exp %12 : vector<160x4xf32>
    %c0_14 = arith.constant 0 : index
    %c0_15 = arith.constant 0 : index
    %14 = vector.load %arg8[%c0_14, %c0_15] : memref<160x4xf32, #tpu.memory_space<vmem>>, vector<160x4xf32>
    tpu.vector_store %arg8[%c0_14, %c0_15], %13 {strides = array<i32>} : memref<160x4xf32, #tpu.memory_space<vmem>>, vector<160x4xf32>,
    return
  }
  func.func @transform_0(%arg0: i32) -> (i32, i32) {
    %c0_i32 = arith.constant 0 : i32
    %c0_i32_0 = arith.constant 0 : i32
    %c0_i32_1 = arith.constant 0 : i32
    return %c0_i32, %c0_i32_0 : i32, i32
  }
  func.func @transform_1(%arg0: i32) -> (i32, i32) {
    %c0_i32 = arith.constant 0 : i32
    %c0_i32_0 = arith.constant 0 : i32
    %c0_i32_1 = arith.constant 0 : i32
    return %c0_i32, %c0_i32_0 : i32, i32
  }
  func.func @transform_2(%arg0: i32) -> (i32, i32) {
    %c0_i32 = arith.constant 0 : i32
    %c0_i32_0 = arith.constant 0 : i32
    %c0_i32_1 = arith.constant 0 : i32
    return %c0_i32, %c0_i32_0 : i32, i32
  }
  func.func @transform_3(%arg0: i32) -> (i32, i32) {
    %c0_i32 = arith.constant 0 : i32
    %c0_i32_0 = arith.constant 0 : i32
    %c0_i32_1 = arith.constant 0 : i32
    return %c0_i32, %c0_i32_0 : i32, i32
  }
  func.func @transform_4(%arg0: i32) -> (i32, i32) {
    %c0_i32 = arith.constant 0 : i32
    %c0_i32_0 = arith.constant 0 : i32
    %c0_i32_1 = arith.constant 0 : i32
    return %c0_i32, %c0_i32_0 : i32, i32
  }
  func.func @transform_5(%arg0: i32) -> (i32, i32) {
    %c0_i32 = arith.constant 0 : i32
    %c0_i32_0 = arith.constant 0 : i32
    %c0_i32_1 = arith.constant 0 : i32
    return %c0_i32, %c0_i32_0 : i32, i32
  }
  func.func @transform_6(%arg0: i32) -> (i32, i32) {
    %c0_i32 = arith.constant 0 : i32
    %c0_i32_0 = arith.constant 0 : i32
    %c0_i32_1 = arith.constant 0 : i32
    return %c0_i32, %c0_i32_0 : i32, i32
  }
  func.func @transform_7(%arg0: i32) -> (i32, i32) {
    %c0_i32 = arith.constant 0 : i32
    %c0_i32_0 = arith.constant 0 : i32
    %c0_i32_1 = arith.constant 0 : i32
    return %c0_i32, %c0_i32_0 : i32, i32
  }
}

</mosaic_0001>

<bundles_post_ra>
// kernel: fcos_forward.5
= control target key start
LH: loop header
LB: loop body
LE: loop exit
PB: predicated region body
PF: predicated region fallthrough
CT: control target
= control target key end

     0   :  { %vm118_vm0 = vcmask 1044480   ;;  %vm119_vm1 = vcmask 1045504   ;;  %vm93_vm2 = vcmask 220160   ;;  %v323_v1 = vmov 65535   ;;  %s449_s1 = inlined_call_operand.vmem [shape: bf16[27,8], index: 1, kind: input, shape index: {}]   ;;  %s450_s0 = inlined_call_operand.vmem [shape: bf16[128,27], index: 0, kind: input, shape index: {}]   ;;  %s451_s2 = inlined_call_operand.vmem [shape: f32[1,8], index: 2, kind: input, shape index: {}]   ;;  %s452_s3 = inlined_call_operand.vmem [shape: f32[128,8], index: 3, kind: output, shape index: {}]  }
   0x1   :  { %v313_v0 = vld [vmem:[%s449_s1] sm:$0xff]   ;;  %v120_v2 = vsel %vm118_vm0, 4294967295, %v323_v1  ;;  %v314_v3 = vld [vmem:[%s449_s1 + $0x8] sm:$0x3f]   ;;  %v319_v10 = vld [vmem:[%s450_s0 + $0x10] sm:$0xff]   ;;  %vm238_vm3 = vcmask 64512  }
   0x2   :  { %288 = vmatprep.subr.bf16.mxu0 %v313_v0  ;;  %308 = vmatprep.subr.bf16.mxu1 %v313_v0  ;;  %v121_v4 = vsel %vm119_vm1, %v120_v2, 0  ;;  %v315_v5 = vld [vmem:[%s450_s0] sm:$0xff]   ;;  %v317_v8 = vld [vmem:[%s450_s0 + $0x8] sm:$0xff]   ;;  %v320_v11 = vld [vmem:[%s450_s0 + $0x30] sm:$0xff]  }
   0x3   :  { %289 = vmatpush3.bf16.msra.mxu0 %v313_v0  ;;  %310 = vmatpush3.bf16.msra.mxu1 %v313_v0  ;;  %v123_v6 = vand.u32 %v314_v3, %v121_v4  ;;  %v316_v7 = vld [vmem:[%s450_s0 + $0x20] sm:$0xff]   ;;  %v318_v9 = vld [vmem:[%s450_s0 + $0x28] sm:$0xff]   ;;  %v321_v12 = vld [vmem:[%s450_s0 + $0x18] sm:$0xff]  }
   0x4   :  { %292 = vmatprep.mubr.msk.bf16.mxu0 %vm93_vm2, %v315_v5  ;;  %300 = vmatprep.mubr.msk.bf16.mxu1 %vm93_vm2, %v316_v7  ;;  %v322_v13 = vld [vmem:[%s450_s0 + $0x38] sm:$0xff]   ;;  %v259_v14 = vld [vmem:[%s451_s2] ss:$0 sm:$0xff] }
   0x5   :  { %290 = vmatprep.subr.bf16.mxu0 %v123_v6  ;;  %309 = vmatprep.subr.bf16.mxu1 %v123_v6 }
   0x7   :  { %291 = vmatpush3.bf16.msra.mxu0 %v123_v6  ;;  %311 = vmatpush3.bf16.msra.mxu1 %v123_v6 }
   0xa   :  { %293 = vmatmul.mubr.msk.bf16.vlgmr.msra.gmra.mrb[0].mxu0 %vm93_vm2, %v317_v8  ;;  %301 = vmatmul.mubr.msk.bf16.vlgmr.msra.gmra.mrb[0].mxu1 %vm93_vm2, %v318_v9 }
   0xb   :  { %296 = vmatprep.mubr.msk.bf16.mxu0 %vm93_vm2, %v319_v10  ;;  %304 = vmatprep.mubr.msk.bf16.mxu1 %vm93_vm2, %v320_v11 }
  0x12   :  { %297 = vmatmul.mubr.msk.bf16.gmra.mrb[4].mxu0 %vm93_vm2, %v321_v12  ;;  %305 = vmatmul.mubr.msk.bf16.gmra.mrb[4].mxu1 %vm93_vm2, %v322_v13 }
  0xdd   :  { %v294_v15 = vpop.f32.mrb[0].mxu0  ;;  %v302_v16 = vpop.f32.mrb[0].mxu1 }
  0xde   :  { %v168_v17 = vadd.f32 %v294_v15, %v259_v14  ;;  %v200_v18 = vadd.f32 %v302_v16, %v259_v14  ;;  %v159_v19 = vpop.f32.mrb[1].mxu0  ;;  %v191_v20 = vpop.f32.mrb[1].mxu1 }
  0xdf   :  { %v160_v21 = vadd.f32 %v259_v14, %v159_v19  ;;  %v192_v22 = vadd.f32 %v259_v14, %v191_v20  ;;  %v295_v23 = vpop.f32.mrb[2].mxu0  ;;  %v303_v24 = vpop.f32.mrb[2].mxu1 }
  0xe0   :  { %v224_v25 = vmax.f32 %v168_v17, 0.0  ;;  %v232_v26 = vmax.f32 %v200_v18, 0.0  ;;  %v171_v27 = vadd.f32 %v295_v23, %v259_v14  ;;  %v203_v28 = vadd.f32 %v303_v24, %v259_v14  ;;  %v162_v29 = vpop.f32.mrb[3].mxu0  ;;  %v194_v30 = vpop.f32.mrb[3].mxu1 }
  0xe1   :  { %v222_v31 = vmax.f32 %v160_v21, 0.0  ;;  %v230_v32 = vmax.f32 %v192_v22, 0.0  ;;  %v163_v33 = vadd.f32 %v259_v14, %v162_v29  ;;  %v195_v34 = vadd.f32 %v259_v14, %v194_v30 }
  0xe2   :  { %241 = vst.msk [vmem:[%s452_s3 + $0x10] sm:$0xff] %vm238_vm3, %v224_v25  ;;  %249 = vst.msk [vmem:[%s452_s3 + $0x50] sm:$0xff] %vm238_vm3, %v232_v26  ;;  %v225_v35 = vmax.f32 %v171_v27, 0.0  ;;  %v233_v36 = vmax.f32 %v203_v28, 0.0 }
  0xe3   :  { %239 = vst.msk [vmem:[%s452_s3] sm:$0xff] %vm238_vm3, %v222_v31  ;;  %247 = vst.msk [vmem:[%s452_s3 + $0x40] sm:$0xff] %vm238_vm3, %v230_v32  ;;  %v223_v37 = vmax.f32 %v163_v33, 0.0  ;;  %v231_v38 = vmax.f32 %v195_v34, 0.0 }
  0xe4   :  { %242 = vst.msk [vmem:[%s452_s3 + $0x18] sm:$0xff] %vm238_vm3, %v225_v35  ;;  %250 = vst.msk [vmem:[%s452_s3 + $0x58] sm:$0xff] %vm238_vm3, %v233_v36 }
  0xe5   :  { %240 = vst.msk [vmem:[%s452_s3 + $0x8] sm:$0xff] %vm238_vm3, %v223_v37  ;;  %248 = vst.msk [vmem:[%s452_s3 + $0x48] sm:$0xff] %vm238_vm3, %v231_v38  ;;  %v298_v39 = vpop.f32.mrb[4].mxu0  ;;  %v306_v40 = vpop.f32.mrb[4].mxu1 }
  0xe6   :  { %v184_v41 = vadd.f32 %v298_v39, %v259_v14  ;;  %v216_v42 = vadd.f32 %v306_v40, %v259_v14  ;;  %v175_v43 = vpop.f32.mrb[5].mxu0  ;;  %v207_v44 = vpop.f32.mrb[5].mxu1 }
  0xe7   :  { %v176_v45 = vadd.f32 %v259_v14, %v175_v43  ;;  %v208_v46 = vadd.f32 %v259_v14, %v207_v44  ;;  %v299_v47 = vpop.f32.mrb[6].mxu0  ;;  %v307_v48 = vpop.f32.mrb[6].mxu1 }
  0xe8   :  { %v228_v49 = vmax.f32 %v184_v41, 0.0  ;;  %v236_v50 = vmax.f32 %v216_v42, 0.0  ;;  %v187_v51 = vadd.f32 %v299_v47, %v259_v14  ;;  %v219_v52 = vadd.f32 %v307_v48, %v259_v14  ;;  %v178_v53 = vpop.f32.mrb[7].mxu0  ;;  %v210_v54 = vpop.f32.mrb[7].mxu1 }
  0xe9   :  { %v226_v55 = vmax.f32 %v176_v45, 0.0  ;;  %v234_v56 = vmax.f32 %v208_v46, 0.0  ;;  %v179_v57 = vadd.f32 %v259_v14, %v178_v53  ;;  %v211_v58 = vadd.f32 %v259_v14, %v210_v54 }
  0xea   :  { %245 = vst.msk [vmem:[%s452_s3 + $0x30] sm:$0xff] %vm238_vm3, %v228_v49  ;;  %253 = vst.msk [vmem:[%s452_s3 + $0x70] sm:$0xff] %vm238_vm3, %v236_v50  ;;  %v229_v59 = vmax.f32 %v187_v51, 0.0  ;;  %v237_v60 = vmax.f32 %v219_v52, 0.0 }
  0xeb   :  { %243 = vst.msk [vmem:[%s452_s3 + $0x20] sm:$0xff] %vm238_vm3, %v226_v55  ;;  %251 = vst.msk [vmem:[%s452_s3 + $0x60] sm:$0xff] %vm238_vm3, %v234_v56  ;;  %v227_v61 = vmax.f32 %v179_v57, 0.0  ;;  %v235_v62 = vmax.f32 %v211_v58, 0.0 }
  0xec   :  { %246 = vst.msk [vmem:[%s452_s3 + $0x38] sm:$0xff] %vm238_vm3, %v229_v59  ;;  %254 = vst.msk [vmem:[%s452_s3 + $0x78] sm:$0xff] %vm238_vm3, %v237_v60 }
  0xed   :  { %244 = vst.msk [vmem:[%s452_s3 + $0x28] sm:$0xff] %vm238_vm3, %v227_v61  ;;  %252 = vst.msk [vmem:[%s452_s3 + $0x68] sm:$0xff] %vm238_vm3, %v235_v62 }

// kernel: fcos_forward.6
= control target key start
LH: loop header
LB: loop body
LE: loop exit
PB: predicated region body
PF: predicated region fallthrough
CT: control target
= control target key end

     0   :  { %vm114_vm0 = vcmask 588800   ;;  %vm139_vm1 = vcmask 1043456   ;;  %vm256_vm2 = vcmask 130048   ;;  %s497_s1 = inlined_call_operand.vmem [shape: bf16[72,16], index: 1, kind: input, shape index: {}]   ;;  %s498_s0 = inlined_call_operand.vmem [shape: bf16[128,72], index: 0, kind: input, shape index: {}]   ;;  %s499_s2 = inlined_call_operand.vmem [shape: f32[1,16], index: 2, kind: input, shape index: {}]   ;;  %s500_s3 = inlined_call_operand.vmem [shape: f32[128,16], index: 3, kind: output, shape index: {}]  }
   0x1   :  { %v350_v0 = vld [vmem:[%s497_s1] sm:$0xff]   ;;  %v351_v1 = vld [vmem:[%s497_s1 + $0x8] sm:$0xff]   ;;  %v352_v2 = vld [vmem:[%s497_s1 + $0x10] sm:$0xff]  }
   0x2   :  { %312 = vmatprep.subr.bf16.mxu0 %v350_v0  ;;  %338 = vmatprep.subr.bf16.mxu1 %v350_v0  ;;  %v355_v3 = vld [vmem:[%s498_s0] sm:$0xff]   ;;  %v353_v5 = vld [vmem:[%s497_s1 + $0x18] sm:$0xff]   ;;  %v357_v8 = vld [vmem:[%s498_s0 + $0x8] sm:$0xff]  }
   0x3   :  { %313 = vmatpush3.bf16.msra.mxu0 %v350_v0  ;;  %343 = vmatpush3.bf16.msra.mxu1 %v350_v0  ;;  %v356_v4 = vld [vmem:[%s498_s0 + $0x20] sm:$0xff]   ;;  %v358_v9 = vld [vmem:[%s498_s0 + $0x28] sm:$0xff]   ;;  %v359_v10 = vld [vmem:[%s498_s0 + $0x10] sm:$0xff]  }
   0x4   :  { %314 = vmatprep.subr.bf16.mxu0 %v351_v1  ;;  %339 = vmatprep.subr.bf16.mxu1 %v351_v1  ;;  %v354_v6 = vld [vmem:[%s497_s1 + $0x20] ss:$0 sps:$4 sm:$0xff]   ;;  %v360_v11 = vld [vmem:[%s498_s0 + $0x30] sm:$0xff]   ;;  %v361_v12 = vld [vmem:[%s498_s0 + $0x18] sm:$0xff]  }
   0x5   :  { %322 = vmatprep.mubr.msk.bf16.mxu0 %vm114_vm0, %v355_v3  ;;  %330 = vmatprep.mubr.msk.bf16.mxu1 %vm114_vm0, %v356_v4  ;;  %v141_v7 = vsel %vm139_vm1, %v354_v6, 0  ;;  %v362_v13 = vld [vmem:[%s498_s0 + $0x38] sm:$0xff]   ;;  %v277_v14 = vld [vmem:[%s499_s2] ss:$0 sm:$0xff] }
   0x7   :  { %315 = vmatpush3.bf16.msra.mxu0 %v351_v1  ;;  %344 = vmatpush3.bf16.msra.mxu1 %v351_v1 }
   0x8   :  { %316 = vmatprep.subr.bf16.mxu0 %v352_v2  ;;  %340 = vmatprep.subr.bf16.mxu1 %v352_v2 }
   0xb   :  { %317 = vmatpush3.bf16.msra.mxu0 %v352_v2  ;;  %345 = vmatpush3.bf16.msra.mxu1 %v352_v2 }
   0xc   :  { %318 = vmatprep.subr.bf16.mxu0 %v353_v5  ;;  %341 = vmatprep.subr.bf16.mxu1 %v353_v5 }
   0xf   :  { %319 = vmatpush3.bf16.msra.mxu0 %v353_v5  ;;  %346 = vmatpush3.bf16.msra.mxu1 %v353_v5 }
  0x10   :  { %348 = vmatprep.subr.msk.bf16.mxu0 %vm139_vm1, %v354_v6  ;;  %349 = vmatprep.subr.msk.bf16.mxu1 %vm139_vm1, %v354_v6 }
  0x13   :  { %321 = vmatpush3.bf16.msra.mxu0 %v141_v7  ;;  %347 = vmatpush3.bf16.msra.mxu1 %v141_v7 }
  0x16   :  { %323 = vmatmul.mubr.msk.bf16.vlgmr.msra.gmra.mrb[0].mxu0 %vm114_vm0, %v357_v8  ;;  %331 = vmatmul.mubr.msk.bf16.vlgmr.msra.gmra.mrb[0].mxu1 %vm114_vm0, %v358_v9 }
  0x17   :  { %326 = vmatprep.mubr.msk.bf16.mxu0 %vm114_vm0, %v359_v10  ;;  %334 = vmatprep.mubr.msk.bf16.mxu1 %vm114_vm0, %v360_v11 }
  0x1e   :  { %327 = vmatmul.mubr.msk.bf16.gmra.mrb[4].mxu0 %vm114_vm0, %v361_v12  ;;  %335 = vmatmul.mubr.msk.bf16.gmra.mrb[4].mxu1 %vm114_vm0, %v362_v13 }
  0xe9   :  { %v324_v15 = vpop.f32.mrb[0].mxu0  ;;  %v332_v16 = vpop.f32.mrb[0].mxu1 }
  0xea   :  { %v186_v17 = vadd.f32 %v324_v15, %v277_v14  ;;  %v218_v18 = vadd.f32 %v332_v16, %v277_v14  ;;  %v177_v19 = vpop.f32.mrb[1].mxu0  ;;  %v209_v20 = vpop.f32.mrb[1].mxu1 }
  0xeb   :  { %v178_v21 = vadd.f32 %v277_v14, %v177_v19  ;;  %v210_v22 = vadd.f32 %v277_v14, %v209_v20  ;;  %v325_v23 = vpop.f32.mrb[2].mxu0  ;;  %v333_v24 = vpop.f32.mrb[2].mxu1 }
  0xec   :  { %v242_v25 = vmax.f32 %v186_v17, 0.0  ;;  %v250_v26 = vmax.f32 %v218_v18, 0.0  ;;  %v189_v27 = vadd.f32 %v325_v23, %v277_v14  ;;  %v221_v28 = vadd.f32 %v333_v24, %v277_v14  ;;  %v180_v29 = vpop.f32.mrb[3].mxu0  ;;  %v212_v30 = vpop.f32.mrb[3].mxu1 }
  0xed   :  { %v240_v31 = vmax.f32 %v178_v21, 0.0  ;;  %v248_v32 = vmax.f32 %v210_v22, 0.0  ;;  %v181_v33 = vadd.f32 %v277_v14, %v180_v29  ;;  %v213_v34 = vadd.f32 %v277_v14, %v212_v30 }
  0xee   :  { %259 = vst.msk [vmem:[%s500_s3 + $0x10] sm:$0xff] %vm256_vm2, %v242_v25  ;;  %267 = vst.msk [vmem:[%s500_s3 + $0x50] sm:$0xff] %vm256_vm2, %v250_v26  ;;  %v243_v35 = vmax.f32 %v189_v27, 0.0  ;;  %v251_v36 = vmax.f32 %v221_v28, 0.0 }
  0xef   :  { %257 = vst.msk [vmem:[%s500_s3] sm:$0xff] %vm256_vm2, %v240_v31  ;;  %265 = vst.msk [vmem:[%s500_s3 + $0x40] sm:$0xff] %vm256_vm2, %v248_v32  ;;  %v241_v37 = vmax.f32 %v181_v33, 0.0  ;;  %v249_v38 = vmax.f32 %v213_v34, 0.0 }
  0xf0   :  { %260 = vst.msk [vmem:[%s500_s3 + $0x18] sm:$0xff] %vm256_vm2, %v243_v35  ;;  %268 = vst.msk [vmem:[%s500_s3 + $0x58] sm:$0xff] %vm256_vm2, %v251_v36 }
  0xf1   :  { %258 = vst.msk [vmem:[%s500_s3 + $0x8] sm:$0xff] %vm256_vm2, %v241_v37  ;;  %266 = vst.msk [vmem:[%s500_s3 + $0x48] sm:$0xff] %vm256_vm2, %v249_v38  ;;  %v328_v39 = vpop.f32.mrb[4].mxu0  ;;  %v336_v40 = vpop.f32.mrb[4].mxu1 }
  0xf2   :  { %v202_v41 = vadd.f32 %v328_v39, %v277_v14  ;;  %v234_v42 = vadd.f32 %v336_v40, %v277_v14  ;;  %v193_v43 = vpop.f32.mrb[5].mxu0  ;;  %v225_v44 = vpop.f32.mrb[5].mxu1 }
  0xf3   :  { %v194_v45 = vadd.f32 %v277_v14, %v193_v43  ;;  %v226_v46 = vadd.f32 %v277_v14, %v225_v44  ;;  %v329_v47 = vpop.f32.mrb[6].mxu0  ;;  %v337_v48 = vpop.f32.mrb[6].mxu1 }
  0xf4   :  { %v246_v49 = vmax.f32 %v202_v41, 0.0  ;;  %v254_v50 = vmax.f32 %v234_v42, 0.0  ;;  %v205_v51 = vadd.f32 %v329_v47, %v277_v14  ;;  %v237_v52 = vadd.f32 %v337_v48, %v277_v14  ;;  %v196_v53 = vpop.f32.mrb[7].mxu0  ;;  %v228_v54 = vpop.f32.mrb[7].mxu1 }
  0xf5   :  { %v244_v55 = vmax.f32 %v194_v45, 0.0  ;;  %v252_v56 = vmax.f32 %v226_v46, 0.0  ;;  %v197_v57 = vadd.f32 %v277_v14, %v196_v53  ;;  %v229_v58 = vadd.f32 %v277_v14, %v228_v54 }
  0xf6   :  { %263 = vst.msk [vmem:[%s500_s3 + $0x30] sm:$0xff] %vm256_vm2, %v246_v49  ;;  %271 = vst.msk [vmem:[%s500_s3 + $0x70] sm:$0xff] %vm256_vm2, %v254_v50  ;;  %v247_v59 = vmax.f32 %v205_v51, 0.0  ;;  %v255_v60 = vmax.f32 %v237_v52, 0.0 }
  0xf7   :  { %261 = vst.msk [vmem:[%s500_s3 + $0x20] sm:$0xff] %vm256_vm2, %v244_v55  ;;  %269 = vst.msk [vmem:[%s500_s3 + $0x60] sm:$0xff] %vm256_vm2, %v252_v56  ;;  %v245_v61 = vmax.f32 %v197_v57, 0.0  ;;  %v253_v62 = vmax.f32 %v229_v58, 0.0 }
  0xf8   :  { %264 = vst.msk [vmem:[%s500_s3 + $0x38] sm:$0xff] %vm256_vm2, %v247_v59  ;;  %272 = vst.msk [vmem:[%s500_s3 + $0x78] sm:$0xff] %vm256_vm2, %v255_v60 }
  0xf9   :  { %262 = vst.msk [vmem:[%s500_s3 + $0x28] sm:$0xff] %vm256_vm2, %v245_v61  ;;  %270 = vst.msk [vmem:[%s500_s3 + $0x68] sm:$0xff] %vm256_vm2, %v253_v62 }

// kernel: fcos_forward.7
= control target key start
LH: loop header
LB: loop body
LE: loop exit
PB: predicated region body
PF: predicated region fallthrough
CT: control target
= control target key end

     0   :  { %v234_v0 = vmov 0   ;;  %vm116_vm0 = vcmask 130048   ;;  %s315_s1 = inlined_call_operand.vmem [shape: bf16[144,16], index: 1, kind: input, shape index: {}]   ;;  %s316_s0 = inlined_call_operand.vmem [shape: bf16[32,144], index: 0, kind: input, shape index: {}]   ;;  %s317_s2 = inlined_call_operand.vmem [shape: f32[1,16], index: 2, kind: input, shape index: {}]   ;;  %s318_s3 = inlined_call_operand.vmem [shape: f32[32,16], index: 3, kind: output, shape index: {}]  }
   0x1   :  { %123 = vmatprep.subr.bf16.mxu0 %v234_v0  ;;  %200 = vmatprep.subr.bf16.mxu1 %v234_v0  ;;  %v219_v1 = vld [vmem:[%s315_s1] sm:$0xff]   ;;  %v220_v2 = vld [vmem:[%s315_s1 + $0x8] sm:$0xff]   ;;  %v221_v3 = vld [vmem:[%s315_s1 + $0x10] sm:$0xff]  }
   0x2   :  { %124 = vmatpush1.bf16.msra.mxu0 %v219_v1  ;;  %209 = vmatpush1.bf16.msra.mxu1 %v219_v1  ;;  %v222_v4 = vld [vmem:[%s315_s1 + $0x18] sm:$0xff]   ;;  %v230_v5 = vld [vmem:[%s316_s0 + $0x4] ss:$8 sps:$4 sm:$0xff]   ;;  %v225_v9 = vld [vmem:[%s315_s1 + $0x30] sm:$0xff]  }
   0x3   :  { %125 = vmatprep.subr.bf16.mxu0 %v234_v0  ;;  %201 = vmatprep.subr.bf16.mxu1 %v234_v0  ;;  %v233_v6 = vld [vmem:[%s316_s0 + $0x14] ss:$8 sps:$4 sm:$0xff]   ;;  %v223_v7 = vld [vmem:[%s315_s1 + $0x20] sm:$0xff]   ;;  %v224_v8 = vld [vmem:[%s315_s1 + $0x28] sm:$0xff]  }
   0x4   :  { %198 = vmatprep.mubr.msk.bf16.mxu0 %vm116_vm0, %v230_v5  ;;  %199 = vmatprep.mubr.msk.bf16.mxu1 %vm116_vm0, %v233_v6  ;;  %v226_v10 = vld [vmem:[%s315_s1 + $0x38] sm:$0xff]   ;;  %v227_v11 = vld [vmem:[%s315_s1 + $0x40] sm:$0xff]  }
   0x5   :  { %v228_v12 = vld [vmem:[%s316_s0] ss:$8 sps:$4 sm:$0xff]   ;;  %v231_v13 = vld [vmem:[%s316_s0 + $0x10] ss:$8 sps:$4 sm:$0xff]  }
   0x6   :  { %126 = vmatpush1.bf16.msra.mxu0 %v220_v2  ;;  %210 = vmatpush1.bf16.msra.mxu1 %v220_v2  ;;  %v184_v14 = vld [vmem:[%s317_s2] ss:$0 sm:$0xff] }
   0x7   :  { %127 = vmatprep.subr.bf16.mxu0 %v234_v0  ;;  %202 = vmatprep.subr.bf16.mxu1 %v234_v0 }
   0xa   :  { %128 = vmatpush1.bf16.msra.mxu0 %v221_v3  ;;  %211 = vmatpush1.bf16.msra.mxu1 %v221_v3 }
   0xb   :  { %129 = vmatprep.subr.bf16.mxu0 %v234_v0  ;;  %203 = vmatprep.subr.bf16.mxu1 %v234_v0 }
   0xe   :  { %130 = vmatpush1.bf16.msra.mxu0 %v222_v4  ;;  %212 = vmatpush1.bf16.msra.mxu1 %v222_v4 }
   0xf   :  { %131 = vmatprep.subr.bf16.mxu0 %v234_v0  ;;  %204 = vmatprep.subr.bf16.mxu1 %v234_v0 }
  0x12   :  { %132 = vmatpush1.bf16.msra.mxu0 %v223_v7  ;;  %213 = vmatpush1.bf16.msra.mxu1 %v223_v7 }
  0x13   :  { %133 = vmatprep.subr.bf16.mxu0 %v234_v0  ;;  %205 = vmatprep.subr.bf16.mxu1 %v234_v0 }
  0x16   :  { %134 = vmatpush1.bf16.msra.mxu0 %v224_v8  ;;  %214 = vmatpush1.bf16.msra.mxu1 %v224_v8 }
  0x17   :  { %135 = vmatprep.subr.bf16.mxu0 %v234_v0  ;;  %206 = vmatprep.subr.bf16.mxu1 %v234_v0 }
  0x1a   :  { %136 = vmatpush1.bf16.msra.mxu0 %v225_v9  ;;  %215 = vmatpush1.bf16.msra.mxu1 %v225_v9 }
  0x1b   :  { %137 = vmatprep.subr.bf16.mxu0 %v234_v0  ;;  %207 = vmatprep.subr.bf16.mxu1 %v234_v0 }
  0x1e   :  { %138 = vmatpush1.bf16.msra.mxu0 %v226_v10  ;;  %216 = vmatpush1.bf16.msra.mxu1 %v226_v10 }
  0x1f   :  { %139 = vmatprep.subr.bf16.mxu0 %v234_v0  ;;  %208 = vmatprep.subr.bf16.mxu1 %v234_v0 }
  0x22   :  { %140 = vmatpush1.bf16.msra.mxu0 %v227_v11  ;;  %217 = vmatpush1.bf16.msra.mxu1 %v227_v11 }
  0x25   :  { %156 = vmatmul.mubr.bf16.vlgmr.msra.gmra.mrb[0].mxu0 %v228_v12  ;;  %164 = vmatmul.mubr.bf16.vlgmr.msra.gmra.mrb[0].mxu1 %v231_v13 }
  0xf8   :  { %v157_v15 = vpop.f32.mrb[0].mxu0  ;;  %v165_v16 = vpop.f32.mrb[0].mxu1 }
  0xf9   :  { %v158_v17 = vadd.f32 %v184_v14, %v157_v15  ;;  %v166_v18 = vadd.f32 %v184_v14, %v165_v16  ;;  %v159_v19 = vpop.f32.mrb[1].mxu0  ;;  %v167_v20 = vpop.f32.mrb[1].mxu1 }
  0xfa   :  { %v160_v21 = vpop.f32.mrb[2].mxu0  ;;  %v168_v22 = vpop.f32.mrb[2].mxu1 }
  0xfb   :  { %v172_v23 = vmax.f32 %v158_v17, 0.0  ;;  %v174_v24 = vmax.f32 %v166_v18, 0.0  ;;  %v161_v25 = vadd.f32 %v184_v14, %v160_v21  ;;  %v169_v26 = vadd.f32 %v184_v14, %v168_v22  ;;  %v162_v27 = vpop.f32.mrb[3].mxu0  ;;  %v170_v28 = vpop.f32.mrb[3].mxu1 }
  0xfd   :  { %176 = vst.msk [vmem:[%s318_s3] sm:$0xff] %vm116_vm0, %v172_v23  ;;  %178 = vst.msk [vmem:[%s318_s3 + $0x10] sm:$0xff] %vm116_vm0, %v174_v24  ;;  %v173_v29 = vmax.f32 %v161_v25, 0.0  ;;  %v175_v30 = vmax.f32 %v169_v26, 0.0 }
  0xff   :  { %177 = vst.msk [vmem:[%s318_s3 + $0x8] sm:$0xff] %vm116_vm0, %v173_v29  ;;  %179 = vst.msk [vmem:[%s318_s3 + $0x18] sm:$0xff] %vm116_vm0, %v175_v30 }

// kernel: fcos_forward.8
= control target key start
LH: loop header
LB: loop body
LE: loop exit
PB: predicated region body
PF: predicated region fallthrough
CT: control target
= control target key end

     0   :  { %v491_v0 = vmov 0   ;;  %vm204_vm0 = vcmask 130048   ;;  %vm368_vm1 = vcmask 261120   ;;  %s714_s1 = inlined_call_operand.vmem [shape: bf16[144,32], index: 1, kind: input, shape index: {}]   ;;  %s715_s0 = inlined_call_operand.vmem [shape: bf16[160,144], index: 0, kind: input, shape index: {}]   ;;  %s716_s2 = inlined_call_operand.vmem [shape: f32[1,32], index: 2, kind: input, shape index: {}]   ;;  %s717_s3 = inlined_call_operand.vmem [shape: f32[160,32], index: 3, kind: output, shape index: {}]  }
   0x1   :  { %235 = vmatprep.subr.bf16.mxu0 %v491_v0  ;;  %433 = vmatprep.subr.bf16.mxu1 %v491_v0  ;;  %v452_v1 = vld [vmem:[%s714_s1] sm:$0xff]   ;;  %v453_v2 = vld [vmem:[%s714_s1 + $0x8] sm:$0xff]   ;;  %v454_v3 = vld [vmem:[%s714_s1 + $0x10] sm:$0xff]  }
   0x2   :  { %236 = vmatpush1.bf16.msra.mxu0 %v452_v1  ;;  %442 = vmatpush1.bf16.msra.mxu1 %v452_v1  ;;  %v455_v4 = vld [vmem:[%s714_s1 + $0x18] sm:$0xff]   ;;  %v463_v5 = vld [vmem:[%s715_s0 + $0x4] ss:$8 sps:$4 sm:$0xff]   ;;  %v458_v9 = vld [vmem:[%s714_s1 + $0x30] sm:$0xff]  }
   0x3   :  { %237 = vmatprep.subr.bf16.mxu0 %v491_v0  ;;  %434 = vmatprep.subr.bf16.mxu1 %v491_v0  ;;  %v466_v6 = vld [vmem:[%s715_s0 + $0x54] ss:$8 sps:$4 sm:$0xff]   ;;  %v456_v7 = vld [vmem:[%s714_s1 + $0x20] sm:$0xff]   ;;  %v457_v8 = vld [vmem:[%s714_s1 + $0x28] sm:$0xff]  }
   0x4   :  { %423 = vmatprep.mubr.msk.bf16.mxu0 %vm204_vm0, %v463_v5  ;;  %428 = vmatprep.mubr.msk.bf16.mxu1 %vm204_vm0, %v466_v6  ;;  %v459_v10 = vld [vmem:[%s714_s1 + $0x38] sm:$0xff]   ;;  %v460_v11 = vld [vmem:[%s714_s1 + $0x40] sm:$0xff]  }
   0x5   :  { %v461_v12 = vld [vmem:[%s715_s0] ss:$8 sps:$4 sm:$0xff]   ;;  %v464_v13 = vld [vmem:[%s715_s0 + $0x50] ss:$8 sps:$4 sm:$0xff]   ;;  %v467_v14 = vld [vmem:[%s715_s0 + $0x14] ss:$8 sps:$4 sm:$0xff]  }
   0x6   :  { %238 = vmatpush1.bf16.msra.mxu0 %v453_v2  ;;  %443 = vmatpush1.bf16.msra.mxu1 %v453_v2  ;;  %v469_v15 = vld [vmem:[%s715_s0 + $0x64] ss:$8 sps:$4 sm:$0xff]   ;;  %v471_v16 = vld [vmem:[%s715_s0 + $0x10] ss:$8 sps:$4 sm:$0xff]   ;;  %v472_v17 = vld [vmem:[%s715_s0 + $0x60] ss:$8 sps:$4 sm:$0xff]  }
   0x7   :  { %239 = vmatprep.subr.bf16.mxu0 %v491_v0  ;;  %435 = vmatprep.subr.bf16.mxu1 %v491_v0  ;;  %v473_v18 = vld [vmem:[%s715_s0 + $0x24] ss:$8 sps:$4 sm:$0xff]   ;;  %v475_v19 = vld [vmem:[%s715_s0 + $0x74] ss:$8 sps:$4 sm:$0xff]   ;;  %v477_v20 = vld [vmem:[%s715_s0 + $0x20] ss:$8 sps:$4 sm:$0xff]  }
   0x8   :  { %v478_v21 = vld [vmem:[%s715_s0 + $0x70] ss:$8 sps:$4 sm:$0xff]   ;;  %v479_v22 = vld [vmem:[%s715_s0 + $0x34] ss:$8 sps:$4 sm:$0xff]   ;;  %v481_v23 = vld [vmem:[%s715_s0 + $0x84] ss:$8 sps:$4 sm:$0xff]  }
   0x9   :  { %v483_v24 = vld [vmem:[%s715_s0 + $0x30] ss:$8 sps:$4 sm:$0xff]   ;;  %v484_v25 = vld [vmem:[%s715_s0 + $0x80] ss:$8 sps:$4 sm:$0xff]   ;;  %v485_v26 = vld [vmem:[%s715_s0 + $0x44] ss:$8 sps:$4 sm:$0xff]  }
   0xa   :  { %240 = vmatpush1.bf16.msra.mxu0 %v454_v3  ;;  %444 = vmatpush1.bf16.msra.mxu1 %v454_v3  ;;  %v487_v27 = vld [vmem:[%s715_s0 + $0x94] ss:$8 sps:$4 sm:$0xff]   ;;  %v489_v28 = vld [vmem:[%s715_s0 + $0x40] ss:$8 sps:$4 sm:$0xff]   ;;  %v490_v29 = vld [vmem:[%s715_s0 + $0x90] ss:$8 sps:$4 sm:$0xff]  }
   0xb   :  { %241 = vmatprep.subr.bf16.mxu0 %v491_v0  ;;  %436 = vmatprep.subr.bf16.mxu1 %v491_v0  ;;  %v612_v30 = vld [vmem:[%s716_s2] ss:$0 sm:$0xff] }
   0xe   :  { %242 = vmatpush1.bf16.msra.mxu0 %v455_v4  ;;  %445 = vmatpush1.bf16.msra.mxu1 %v455_v4 }
   0xf   :  { %243 = vmatprep.subr.bf16.mxu0 %v491_v0  ;;  %437 = vmatprep.subr.bf16.mxu1 %v491_v0 }
  0x12   :  { %244 = vmatpush1.bf16.msra.mxu0 %v456_v7  ;;  %446 = vmatpush1.bf16.msra.mxu1 %v456_v7 }
  0x13   :  { %245 = vmatprep.subr.bf16.mxu0 %v491_v0  ;;  %438 = vmatprep.subr.bf16.mxu1 %v491_v0 }
  0x16   :  { %246 = vmatpush1.bf16.msra.mxu0 %v457_v8  ;;  %447 = vmatpush1.bf16.msra.mxu1 %v457_v8 }
  0x17   :  { %247 = vmatprep.subr.bf16.mxu0 %v491_v0  ;;  %439 = vmatprep.subr.bf16.mxu1 %v491_v0 }
  0x1a   :  { %248 = vmatpush1.bf16.msra.mxu0 %v458_v9  ;;  %448 = vmatpush1.bf16.msra.mxu1 %v458_v9 }
  0x1b   :  { %249 = vmatprep.subr.bf16.mxu0 %v491_v0  ;;  %440 = vmatprep.subr.bf16.mxu1 %v491_v0 }
  0x1e   :  { %250 = vmatpush1.bf16.msra.mxu0 %v459_v10  ;;  %449 = vmatpush1.bf16.msra.mxu1 %v459_v10 }
  0x1f   :  { %251 = vmatprep.subr.bf16.mxu0 %v491_v0  ;;  %441 = vmatprep.subr.bf16.mxu1 %v491_v0 }
  0x22   :  { %252 = vmatpush1.bf16.msra.mxu0 %v460_v11  ;;  %450 = vmatpush1.bf16.msra.mxu1 %v460_v11 }
  0x25   :  { %268 = vmatmul.mubr.bf16.vlgmr.msra.gmra.mrb[0].mxu0 %v461_v12  ;;  %308 = vmatmul.mubr.bf16.vlgmr.msra.gmra.mrb[0].mxu1 %v464_v13 }
  0x26   :  { %424 = vmatprep.mubr.msk.bf16.mxu0 %vm204_vm0, %v467_v14  ;;  %429 = vmatprep.mubr.msk.bf16.mxu1 %vm204_vm0, %v469_v15 }
  0x2d   :  { %276 = vmatmul.mubr.bf16.gmra.mrb[4].mxu0 %v471_v16  ;;  %316 = vmatmul.mubr.bf16.gmra.mrb[4].mxu1 %v472_v17 }
  0x2e   :  { %425 = vmatprep.mubr.msk.bf16.mxu0 %vm204_vm0, %v473_v18  ;;  %430 = vmatprep.mubr.msk.bf16.mxu1 %vm204_vm0, %v475_v19 }
  0x35   :  { %284 = vmatmul.mubr.bf16.gmra.mrb[8].mxu0 %v477_v20  ;;  %324 = vmatmul.mubr.bf16.gmra.mrb[8].mxu1 %v478_v21 }
  0x36   :  { %426 = vmatprep.mubr.msk.bf16.mxu0 %vm204_vm0, %v479_v22  ;;  %431 = vmatprep.mubr.msk.bf16.mxu1 %vm204_vm0, %v481_v23 }
  0x3d   :  { %292 = vmatmul.mubr.bf16.gmra.mrb[12].mxu0 %v483_v24  ;;  %332 = vmatmul.mubr.bf16.gmra.mrb[12].mxu1 %v484_v25 }
  0x3e   :  { %427 = vmatprep.mubr.msk.bf16.mxu0 %vm204_vm0, %v485_v26  ;;  %432 = vmatprep.mubr.msk.bf16.mxu1 %vm204_vm0, %v487_v27 }
  0x45   :  { %300 = vmatmul.mubr.bf16.gmra.mrb[16].mxu0 %v489_v28  ;;  %340 = vmatmul.mubr.bf16.gmra.mrb[16].mxu1 %v490_v29 }
  0xf8   :  { %v269_v31 = vpop.f32.mrb[0].mxu0  ;;  %v309_v32 = vpop.f32.mrb[0].mxu1 }
  0xf9   :  { %v270_v33 = vadd.f32 %v612_v30, %v269_v31  ;;  %v310_v34 = vadd.f32 %v612_v30, %v309_v32  ;;  %v271_v35 = vpop.f32.mrb[1].mxu0  ;;  %v311_v36 = vpop.f32.mrb[1].mxu1 }
  0xfa   :  { %v272_v37 = vpop.f32.mrb[2].mxu0  ;;  %v312_v38 = vpop.f32.mrb[2].mxu1 }
  0xfb   :  { %v348_v39 = vmax.f32 %v270_v33, 0.0  ;;  %v358_v40 = vmax.f32 %v310_v34, 0.0  ;;  %v273_v41 = vadd.f32 %v612_v30, %v272_v37  ;;  %v313_v42 = vadd.f32 %v612_v30, %v312_v38  ;;  %v274_v43 = vpop.f32.mrb[3].mxu0  ;;  %v314_v44 = vpop.f32.mrb[3].mxu1 }
  0xfd   :  { %369 = vst.msk [vmem:[%s717_s3] sm:$0xff] %vm368_vm1, %v348_v39  ;;  %379 = vst.msk [vmem:[%s717_s3 + $0x50] sm:$0xff] %vm368_vm1, %v358_v40  ;;  %v349_v45 = vmax.f32 %v273_v41, 0.0  ;;  %v359_v46 = vmax.f32 %v313_v42, 0.0 }
  0xff   :  { %370 = vst.msk [vmem:[%s717_s3 + $0x8] sm:$0xff] %vm368_vm1, %v349_v45  ;;  %380 = vst.msk [vmem:[%s717_s3 + $0x58] sm:$0xff] %vm368_vm1, %v359_v46 }
 0x100   :  { %v277_v47 = vpop.f32.mrb[4].mxu0  ;;  %v317_v48 = vpop.f32.mrb[4].mxu1 }
 0x101   :  { %v278_v49 = vadd.f32 %v612_v30, %v277_v47  ;;  %v318_v50 = vadd.f32 %v612_v30, %v317_v48  ;;  %v279_v51 = vpop.f32.mrb[5].mxu0  ;;  %v319_v52 = vpop.f32.mrb[5].mxu1 }
 0x102   :  { %v280_v53 = vpop.f32.mrb[6].mxu0  ;;  %v320_v54 = vpop.f32.mrb[6].mxu1 }
 0x103   :  { %v350_v55 = vmax.f32 %v278_v49, 0.0  ;;  %v360_v56 = vmax.f32 %v318_v50, 0.0  ;;  %v281_v57 = vadd.f32 %v612_v30, %v280_v53  ;;  %v321_v58 = vadd.f32 %v612_v30, %v320_v54  ;;  %v282_v59 = vpop.f32.mrb[7].mxu0  ;;  %v322_v60 = vpop.f32.mrb[7].mxu1 }
 0x105   :  { %371 = vst.msk [vmem:[%s717_s3 + $0x10] sm:$0xff] %vm368_vm1, %v350_v55  ;;  %381 = vst.msk [vmem:[%s717_s3 + $0x60] sm:$0xff] %vm368_vm1, %v360_v56  ;;  %v351_v61 = vmax.f32 %v281_v57, 0.0  ;;  %v361_v62 = vmax.f32 %v321_v58, 0.0 }
 0x107   :  { %372 = vst.msk [vmem:[%s717_s3 + $0x18] sm:$0xff] %vm368_vm1, %v351_v61  ;;  %382 = vst.msk [vmem:[%s717_s3 + $0x68] sm:$0xff] %vm368_vm1, %v361_v62 }
 0x108   :  { %v285_v63 = vpop.f32.mrb[8].mxu0  ;;  %v325_v0 = vpop.f32.mrb[8].mxu1 }
 0x109   :  { %v286_v1 = vadd.f32 %v612_v30, %v285_v63  ;;  %v326_v2 = vadd.f32 %v612_v30, %v325_v0  ;;  %v287_v3 = vpop.f32.mrb[9].mxu0  ;;  %v327_v4 = vpop.f32.mrb[9].mxu1 }
 0x10a   :  { %v288_v5 = vpop.f32.mrb[10].mxu0  ;;  %v328_v6 = vpop.f32.mrb[10].mxu1 }
 0x10b   :  { %v352_v7 = vmax.f32 %v286_v1, 0.0  ;;  %v362_v8 = vmax.f32 %v326_v2, 0.0  ;;  %v289_v9 = vadd.f32 %v612_v30, %v288_v5  ;;  %v329_v10 = vadd.f32 %v612_v30, %v328_v6  ;;  %v290_v11 = vpop.f32.mrb[11].mxu0  ;;  %v330_v12 = vpop.f32.mrb[11].mxu1 }
 0x10d   :  { %373 = vst.msk [vmem:[%s717_s3 + $0x20] sm:$0xff] %vm368_vm1, %v352_v7  ;;  %383 = vst.msk [vmem:[%s717_s3 + $0x70] sm:$0xff] %vm368_vm1, %v362_v8  ;;  %v353_v13 = vmax.f32 %v289_v9, 0.0  ;;  %v363_v14 = vmax.f32 %v329_v10, 0.0 }
 0x10f   :  { %374 = vst.msk [vmem:[%s717_s3 + $0x28] sm:$0xff] %vm368_vm1, %v353_v13  ;;  %384 = vst.msk [vmem:[%s717_s3 + $0x78] sm:$0xff] %vm368_vm1, %v363_v14 }
 0x110   :  { %v293_v15 = vpop.f32.mrb[12].mxu0  ;;  %v333_v16 = vpop.f32.mrb[12].mxu1 }
 0x111   :  { %v294_v17 = vadd.f32 %v612_v30, %v293_v15  ;;  %v334_v18 = vadd.f32 %v612_v30, %v333_v16  ;;  %v295_v19 = vpop.f32.mrb[13].mxu0  ;;  %v335_v20 = vpop.f32.mrb[13].mxu1 }
 0x112   :  { %v296_v21 = vpop.f32.mrb[14].mxu0  ;;  %v336_v22 = vpop.f32.mrb[14].mxu1 }
 0x113   :  { %v354_v23 = vmax.f32 %v294_v17, 0.0  ;;  %v364_v24 = vmax.f32 %v334_v18, 0.0  ;;  %v297_v25 = vadd.f32 %v612_v30, %v296_v21  ;;  %v337_v26 = vadd.f32 %v612_v30, %v336_v22  ;;  %v298_v27 = vpop.f32.mrb[15].mxu0  ;;  %v338_v28 = vpop.f32.mrb[15].mxu1 }
 0x115   :  { %375 = vst.msk [vmem:[%s717_s3 + $0x30] sm:$0xff] %vm368_vm1, %v354_v23  ;;  %385 = vst.msk [vmem:[%s717_s3 + $0x80] sm:$0xff] %vm368_vm1, %v364_v24  ;;  %v355_v29 = vmax.f32 %v297_v25, 0.0  ;;  %v365_v31 = vmax.f32 %v337_v26, 0.0 }
 0x117   :  { %376 = vst.msk [vmem:[%s717_s3 + $0x38] sm:$0xff] %vm368_vm1, %v355_v29  ;;  %386 = vst.msk [vmem:[%s717_s3 + $0x88] sm:$0xff] %vm368_vm1, %v365_v31 }
 0x118   :  { %v301_v32 = vpop.f32.mrb[16].mxu0  ;;  %v341_v33 = vpop.f32.mrb[16].mxu1 }
 0x119   :  { %v302_v34 = vadd.f32 %v612_v30, %v301_v32  ;;  %v342_v35 = vadd.f32 %v612_v30, %v341_v33  ;;  %v303_v36 = vpop.f32.mrb[17].mxu0  ;;  %v343_v37 = vpop.f32.mrb[17].mxu1 }
 0x11a   :  { %v304_v38 = vpop.f32.mrb[18].mxu0  ;;  %v344_v39 = vpop.f32.mrb[18].mxu1 }
 0x11b   :  { %v356_v40 = vmax.f32 %v302_v34, 0.0  ;;  %v366_v41 = vmax.f32 %v342_v35, 0.0  ;;  %v305_v42 = vadd.f32 %v612_v30, %v304_v38  ;;  %v345_v43 = vadd.f32 %v612_v30, %v344_v39  ;;  %v306_v44 = vpop.f32.mrb[19].mxu0  ;;  %v346_v45 = vpop.f32.mrb[19].mxu1 }
 0x11d   :  { %377 = vst.msk [vmem:[%s717_s3 + $0x40] sm:$0xff] %vm368_vm1, %v356_v40  ;;  %387 = vst.msk [vmem:[%s717_s3 + $0x90] sm:$0xff] %vm368_vm1, %v366_v41  ;;  %v357_v46 = vmax.f32 %v305_v42, 0.0  ;;  %v367_v47 = vmax.f32 %v345_v43, 0.0 }
 0x11f   :  { %378 = vst.msk [vmem:[%s717_s3 + $0x48] sm:$0xff] %vm368_vm1, %v357_v46  ;;  %388 = vst.msk [vmem:[%s717_s3 + $0x98] sm:$0xff] %vm368_vm1, %v367_v47 }

// kernel: fcos_forward.9
= control target key start
LH: loop header
LB: loop body
LE: loop exit
PB: predicated region body
PF: predicated region fallthrough
CT: control target
= control target key end

     0   :  { %v980_v0 = vmov 0   ;;  %vm215_vm0 = vcmask 130048   ;;  %vm359_vm1 = vcmask 72704   ;;  %vm752_vm2 = vcmask 31744   ;;  %s1425_s4 = inlined_call_operand.vmem [shape: bf16[144,4], index: 4, kind: input, shape index: {}]   ;;  %s1426_s2 = inlined_call_operand.vmem [shape: bf16[144,9], index: 2, kind: input, shape index: {}]   ;;  %s1427_s1 = inlined_call_operand.vmem [shape: bf16[160,144], index: 1, kind: input, shape index: {}]   ;;  %s1428_s0 = inlined_call_operand.vmem [shape: bf16[160,144], index: 0, kind: input, shape index: {}]   ;;  %s1429_s5 = inlined_call_operand.vmem [shape: f32[1,4], index: 5, kind: input, shape index: {}]   ;;  %s1430_s3 = inlined_call_operand.vmem [shape: f32[1,9], index: 3, kind: input, shape index: {}]   ;;  %s1431_s6 = inlined_call_operand.vmem [shape: f32[160,9], index: 6, kind: output, shape index: {0}]   ;;  %s1432_s7 = inlined_call_operand.vmem [shape: f32[160,4], index: 7, kind: output, shape index: {1}]  }
   0x1   :  { %599 = vmatprep.subr.bf16.mxu1 %v980_v0  ;;  %v862_v1 = vld [vmem:[%s1425_s4] sm:$0xff]   ;;  %246 = vmatprep.subr.bf16.mxu0 %v980_v0  ;;  %v863_v2 = vld [vmem:[%s1425_s4 + $0x8] sm:$0xff]   ;;  %v864_v5 = vld [vmem:[%s1425_s4 + $0x10] sm:$0xff]  }
   0x2   :  { %600 = vmatpush1.bf16.msra.mxu1 %v862_v1  ;;  %v865_v3 = vld [vmem:[%s1426_s2] sm:$0xff]   ;;  %v867_v4 = vld [vmem:[%s1426_s2 + $0x8] sm:$0xff]   ;;  %v869_v6 = vld [vmem:[%s1426_s2 + $0x10] sm:$0xff]  }
   0x3   :  { %601 = vmatprep.subr.bf16.mxu1 %v980_v0  ;;  %247 = vmatpush1.bf16.msra.mxu0 %v865_v3  ;;  %v866_v7 = vld [vmem:[%s1425_s4 + $0x18] sm:$0xff]   ;;  %v868_v9 = vld [vmem:[%s1425_s4 + $0x20] sm:$0xff]   ;;  %v870_v12 = vld [vmem:[%s1425_s4 + $0x28] sm:$0xff]  }
   0x4   :  { %248 = vmatprep.subr.bf16.mxu0 %v980_v0  ;;  %v871_v8 = vld [vmem:[%s1426_s2 + $0x18] sm:$0xff]   ;;  %v873_v10 = vld [vmem:[%s1426_s2 + $0x20] sm:$0xff]   ;;  %v875_v13 = vld [vmem:[%s1426_s2 + $0x28] sm:$0xff]  }
   0x5   :  { %v880_v11 = vld [vmem:[%s1427_s1 + $0x4] ss:$8 sps:$4 sm:$0xff]   ;;  %v872_v15 = vld [vmem:[%s1425_s4 + $0x30] sm:$0xff]   ;;  %v874_v17 = vld [vmem:[%s1425_s4 + $0x38] sm:$0xff]  }
   0x6   :  { %602 = vmatpush1.bf16.msra.mxu1 %v863_v2  ;;  %851 = vmatprep.mubr.msk.bf16.mxu1 %vm215_vm0, %v880_v11  ;;  %v888_v14 = vld [vmem:[%s1428_s0 + $0x4] ss:$8 sps:$4 sm:$0xff]   ;;  %v877_v16 = vld [vmem:[%s1426_s2 + $0x30] sm:$0xff]   ;;  %v881_v18 = vld [vmem:[%s1426_s2 + $0x38] sm:$0xff]  }
   0x7   :  { %603 = vmatprep.subr.bf16.mxu1 %v980_v0  ;;  %249 = vmatpush1.bf16.msra.mxu0 %v867_v4  ;;  %v876_v19 = vld [vmem:[%s1425_s4 + $0x40] sm:$0xff]   ;;  %v883_v22 = vld [vmem:[%s1427_s1 + $0x14] ss:$8 sps:$4 sm:$0xff]   ;;  %v885_v25 = vld [vmem:[%s1427_s1 + $0x10] ss:$8 sps:$4 sm:$0xff]  }
   0x8   :  { %250 = vmatprep.subr.bf16.mxu0 %v980_v0  ;;  %811 = vmatprep.mubr.msk.bf16.mxu0 %vm215_vm0, %v888_v14  ;;  %v878_v20 = vld [vmem:[%s1427_s1] ss:$8 sps:$4 sm:$0xff]   ;;  %v892_v24 = vld [vmem:[%s1428_s0 + $0x14] ss:$8 sps:$4 sm:$0xff]   ;;  %v889_v26 = vld [vmem:[%s1427_s1 + $0x24] ss:$8 sps:$4 sm:$0xff]  }
   0x9   :  { %v882_v21 = vld [vmem:[%s1426_s2 + $0x40] sm:$0xff]   ;;  %v894_v27 = vld [vmem:[%s1428_s0 + $0x10] ss:$8 sps:$4 sm:$0xff]   ;;  %v895_v30 = vld [vmem:[%s1427_s1 + $0x34] ss:$8 sps:$4 sm:$0xff]  }
   0xa   :  { %604 = vmatpush1.bf16.msra.mxu1 %v864_v5  ;;  %v886_v23 = vld [vmem:[%s1428_s0] ss:$8 sps:$4 sm:$0xff]   ;;  %v898_v28 = vld [vmem:[%s1428_s0 + $0x24] ss:$8 sps:$4 sm:$0xff]   ;;  %v904_v32 = vld [vmem:[%s1428_s0 + $0x34] ss:$8 sps:$4 sm:$0xff]  }
   0xb   :  { %605 = vmatprep.subr.bf16.mxu1 %v980_v0  ;;  %251 = vmatpush1.bf16.msra.mxu0 %v869_v6  ;;  %v891_v29 = vld [vmem:[%s1427_s1 + $0x20] ss:$8 sps:$4 sm:$0xff]   ;;  %v897_v33 = vld [vmem:[%s1427_s1 + $0x30] ss:$8 sps:$4 sm:$0xff]   ;;  %v901_v34 = vld [vmem:[%s1427_s1 + $0x44] ss:$8 sps:$4 sm:$0xff]  }
   0xc   :  { %252 = vmatprep.subr.bf16.mxu0 %v980_v0  ;;  %v900_v31 = vld [vmem:[%s1428_s0 + $0x20] ss:$8 sps:$4 sm:$0xff]   ;;  %v906_v35 = vld [vmem:[%s1428_s0 + $0x30] ss:$8 sps:$4 sm:$0xff]   ;;  %v910_v36 = vld [vmem:[%s1428_s0 + $0x44] ss:$8 sps:$4 sm:$0xff]  }
   0xd   :  { %v903_v37 = vld [vmem:[%s1427_s1 + $0x40] ss:$8 sps:$4 sm:$0xff]   ;;  %v907_v38 = vld [vmem:[%s1427_s1 + $0x54] ss:$8 sps:$4 sm:$0xff]   ;;  %v909_v41 = vld [vmem:[%s1427_s1 + $0x50] ss:$8 sps:$4 sm:$0xff]  }
   0xe   :  { %606 = vmatpush1.bf16.msra.mxu1 %v866_v7  ;;  %v912_v39 = vld [vmem:[%s1428_s0 + $0x40] ss:$8 sps:$4 sm:$0xff]   ;;  %v916_v40 = vld [vmem:[%s1428_s0 + $0x54] ss:$8 sps:$4 sm:$0xff]   ;;  %v913_v42 = vld [vmem:[%s1427_s1 + $0x64] ss:$8 sps:$4 sm:$0xff]  }
   0xf   :  { %607 = vmatprep.subr.bf16.mxu1 %v980_v0  ;;  %253 = vmatpush1.bf16.msra.mxu0 %v871_v8  ;;  %v918_v43 = vld [vmem:[%s1428_s0 + $0x50] ss:$8 sps:$4 sm:$0xff]   ;;  %v922_v44 = vld [vmem:[%s1428_s0 + $0x64] ss:$8 sps:$4 sm:$0xff]   ;;  %v915_v45 = vld [vmem:[%s1427_s1 + $0x60] ss:$8 sps:$4 sm:$0xff]  }
  0x10   :  { %254 = vmatprep.subr.bf16.mxu0 %v980_v0  ;;  %v919_v46 = vld [vmem:[%s1427_s1 + $0x74] ss:$8 sps:$4 sm:$0xff]   ;;  %v924_v47 = vld [vmem:[%s1428_s0 + $0x60] ss:$8 sps:$4 sm:$0xff]   ;;  %v921_v49 = vld [vmem:[%s1427_s1 + $0x70] ss:$8 sps:$4 sm:$0xff]  }
  0x11   :  { %v928_v48 = vld [vmem:[%s1428_s0 + $0x74] ss:$8 sps:$4 sm:$0xff]   ;;  %v925_v50 = vld [vmem:[%s1427_s1 + $0x84] ss:$8 sps:$4 sm:$0xff]   ;;  %v930_v51 = vld [vmem:[%s1428_s0 + $0x70] ss:$8 sps:$4 sm:$0xff]  }
  0x12   :  { %608 = vmatpush1.bf16.msra.mxu1 %v868_v9  ;;  %v934_v52 = vld [vmem:[%s1428_s0 + $0x84] ss:$8 sps:$4 sm:$0xff]   ;;  %v927_v53 = vld [vmem:[%s1427_s1 + $0x80] ss:$8 sps:$4 sm:$0xff]   ;;  %v931_v54 = vld [vmem:[%s1427_s1 + $0x94] ss:$8 sps:$4 sm:$0xff]  }
  0x13   :  { %609 = vmatprep.subr.bf16.mxu1 %v980_v0  ;;  %255 = vmatpush1.bf16.msra.mxu0 %v873_v10  ;;  %v936_v55 = vld [vmem:[%s1428_s0 + $0x80] ss:$8 sps:$4 sm:$0xff]   ;;  %v937_v56 = vld [vmem:[%s1428_s0 + $0x94] ss:$8 sps:$4 sm:$0xff]   ;;  %v933_v57 = vld [vmem:[%s1427_s1 + $0x90] ss:$8 sps:$4 sm:$0xff]  }
  0x14   :  { %256 = vmatprep.subr.bf16.mxu0 %v980_v0  ;;  %v939_v58 = vld [vmem:[%s1428_s0 + $0x90] ss:$8 sps:$4 sm:$0xff]   ;;  %v1218_v59 = vld [vmem:[%s1429_s5] ss:$0 sm:$0xff] }
  0x15   :  { %v1224_v63 = vld [vmem:[%s1430_s3] ss:$0 sm:$0xff] }
  0x16   :  { %610 = vmatpush1.bf16.msra.mxu1 %v870_v12 }
  0x17   :  { %611 = vmatprep.subr.bf16.mxu1 %v980_v0  ;;  %257 = vmatpush1.bf16.msra.mxu0 %v875_v13 }
  0x18   :  { %258 = vmatprep.subr.bf16.mxu0 %v980_v0 }
  0x1a   :  { %612 = vmatpush1.bf16.msra.mxu1 %v872_v15 }
  0x1b   :  { %613 = vmatprep.subr.bf16.mxu1 %v980_v0  ;;  %259 = vmatpush1.bf16.msra.mxu0 %v877_v16 }
  0x1c   :  { %260 = vmatprep.subr.bf16.mxu0 %v980_v0 }
  0x1e   :  { %614 = vmatpush1.bf16.msra.mxu1 %v874_v17 }
  0x1f   :  { %615 = vmatprep.subr.bf16.mxu1 %v980_v0  ;;  %261 = vmatpush1.bf16.msra.mxu0 %v881_v18 }
  0x20   :  { %262 = vmatprep.subr.bf16.mxu0 %v980_v0 }
  0x22   :  { %616 = vmatpush1.bf16.msra.mxu1 %v876_v19 }
  0x23   :  { %263 = vmatpush1.bf16.msra.mxu0 %v882_v21 }
  0x25   :  { %632 = vmatmul.mubr.bf16.vlgmr.msra.gmra.mrb[0].mxu1 %v878_v20 }
  0x26   :  { %852 = vmatprep.mubr.msk.bf16.mxu1 %vm215_vm0, %v883_v22  ;;  %279 = vmatmul.mubr.bf16.vlgmr.msra.gmra.mrb[0].mxu0 %v886_v23 }
  0x27   :  { %812 = vmatprep.mubr.msk.bf16.mxu0 %vm215_vm0, %v892_v24 }
  0x2d   :  { %640 = vmatmul.mubr.bf16.gmra.mrb[4].mxu1 %v885_v25 }
  0x2e   :  { %853 = vmatprep.mubr.msk.bf16.mxu1 %vm215_vm0, %v889_v26  ;;  %287 = vmatmul.mubr.bf16.gmra.mrb[4].mxu0 %v894_v27 }
  0x2f   :  { %813 = vmatprep.mubr.msk.bf16.mxu0 %vm215_vm0, %v898_v28 }
  0x35   :  { %648 = vmatmul.mubr.bf16.gmra.mrb[8].mxu1 %v891_v29 }
  0x36   :  { %854 = vmatprep.mubr.msk.bf16.mxu1 %vm215_vm0, %v895_v30  ;;  %295 = vmatmul.mubr.bf16.gmra.mrb[8].mxu0 %v900_v31 }
  0x37   :  { %814 = vmatprep.mubr.msk.bf16.mxu0 %vm215_vm0, %v904_v32 }
  0x3d   :  { %656 = vmatmul.mubr.bf16.gmra.mrb[12].mxu1 %v897_v33 }
  0x3e   :  { %855 = vmatprep.mubr.msk.bf16.mxu1 %vm215_vm0, %v901_v34  ;;  %303 = vmatmul.mubr.bf16.gmra.mrb[12].mxu0 %v906_v35 }
  0x3f   :  { %815 = vmatprep.mubr.msk.bf16.mxu0 %vm215_vm0, %v910_v36 }
  0x45   :  { %664 = vmatmul.mubr.bf16.gmra.mrb[16].mxu1 %v903_v37 }
  0x46   :  { %856 = vmatprep.mubr.msk.bf16.mxu1 %vm215_vm0, %v907_v38  ;;  %311 = vmatmul.mubr.bf16.gmra.mrb[16].mxu0 %v912_v39 }
  0x47   :  { %816 = vmatprep.mubr.msk.bf16.mxu0 %vm215_vm0, %v916_v40 }
  0x4d   :  { %672 = vmatmul.mubr.bf16.gmra.mrb[20].mxu1 %v909_v41 }
  0x4e   :  { %857 = vmatprep.mubr.msk.bf16.mxu1 %vm215_vm0, %v913_v42  ;;  %319 = vmatmul.mubr.bf16.gmra.mrb[20].mxu0 %v918_v43 }
  0x4f   :  { %817 = vmatprep.mubr.msk.bf16.mxu0 %vm215_vm0, %v922_v44 }
  0x55   :  { %680 = vmatmul.mubr.bf16.gmra.mrb[24].mxu1 %v915_v45 }
  0x56   :  { %858 = vmatprep.mubr.msk.bf16.mxu1 %vm215_vm0, %v919_v46  ;;  %327 = vmatmul.mubr.bf16.gmra.mrb[24].mxu0 %v924_v47 }
  0x57   :  { %818 = vmatprep.mubr.msk.bf16.mxu0 %vm215_vm0, %v928_v48 }
  0x5d   :  { %688 = vmatmul.mubr.bf16.gmra.mrb[28].mxu1 %v921_v49 }
  0x5e   :  { %859 = vmatprep.mubr.msk.bf16.mxu1 %vm215_vm0, %v925_v50  ;;  %335 = vmatmul.mubr.bf16.gmra.mrb[28].mxu0 %v930_v51 }
  0x5f   :  { %819 = vmatprep.mubr.msk.bf16.mxu0 %vm215_vm0, %v934_v52 }
  0x65   :  { %696 = vmatmul.mubr.bf16.gmra.mrb[32].mxu1 %v927_v53 }
  0x66   :  { %860 = vmatprep.mubr.msk.bf16.mxu1 %vm215_vm0, %v931_v54  ;;  %343 = vmatmul.mubr.bf16.gmra.mrb[32].mxu0 %v936_v55 }
  0x67   :  { %820 = vmatprep.mubr.msk.bf16.mxu0 %vm215_vm0, %v937_v56 }
  0x6d   :  { %704 = vmatmul.mubr.bf16.gmra.mrb[36].mxu1 %v933_v57 }
  0x6e   :  { %351 = vmatmul.mubr.bf16.gmra.mrb[36].mxu0 %v939_v58 }
  0xf8   :  { %v633_v60 = vpop.f32.mrb[0].mxu1 }
  0xf9   :  { %v634_v61 = vadd.f32 %v1218_v59, %v633_v60  ;;  %v635_v62 = vpop.f32.mrb[1].mxu1  ;;  %v280_v4 = vpop.f32.mrb[0].mxu0 }
  0xfa   :  { %v636_v0 = vpop.f32.mrb[2].mxu1  ;;  %v281_v5 = vadd.f32 %v1224_v63, %v280_v4  ;;  %v282_v6 = vpop.f32.mrb[1].mxu0 }
  0xfb   :  { %v712_v1 = vmul.f32 1.442695, %v634_v61  ;;  %v637_v2 = vadd.f32 %v1218_v59, %v636_v0  ;;  %v638_v3 = vpop.f32.mrb[3].mxu1  ;;  %v283_v8 = vpop.f32.mrb[2].mxu0 }
  0xfc   :  { %360 = vst.msk [vmem:[%s1431_s6] sm:$0xff] %vm359_vm1, %v281_v5  ;;  %v284_v9 = vadd.f32 %v1224_v63, %v283_v8  ;;  %v285_v10 = vpop.f32.mrb[3].mxu0 }
  0xfd   :  { %940 = vpow2.f32 %v712_v1  ;;  %v714_v7 = vmul.f32 1.442695, %v637_v2 }
  0xfe   :  { %361 = vst.msk [vmem:[%s1431_s6 + $0x8] sm:$0xff] %vm359_vm1, %v284_v9 }
  0xff   :  { %942 = vpow2.f32 %v714_v7 }
 0x100   :  { %v641_v11 = vpop.f32.mrb[4].mxu1 }
 0x101   :  { %v642_v12 = vadd.f32 %v1218_v59, %v641_v11  ;;  %v643_v13 = vpop.f32.mrb[5].mxu1  ;;  %v288_v18 = vpop.f32.mrb[4].mxu0 }
 0x102   :  { %v644_v14 = vpop.f32.mrb[6].mxu1  ;;  %v289_v19 = vadd.f32 %v1224_v63, %v288_v18  ;;  %v290_v20 = vpop.f32.mrb[5].mxu0 }
 0x103   :  { %v716_v15 = vmul.f32 1.442695, %v642_v12  ;;  %v645_v16 = vadd.f32 %v1218_v59, %v644_v14  ;;  %v646_v17 = vpop.f32.mrb[7].mxu1  ;;  %v291_v22 = vpop.f32.mrb[6].mxu0 }
 0x104   :  { %362 = vst.msk [vmem:[%s1431_s6 + $0x10] sm:$0xff] %vm359_vm1, %v289_v19  ;;  %v292_v23 = vadd.f32 %v1224_v63, %v291_v22  ;;  %v293_v24 = vpop.f32.mrb[7].mxu0 }
 0x105   :  { %944 = vpow2.f32 %v716_v15  ;;  %v718_v21 = vmul.f32 1.442695, %v645_v16 }
 0x106   :  { %363 = vst.msk [vmem:[%s1431_s6 + $0x18] sm:$0xff] %vm359_vm1, %v292_v23 }
 0x107   :  { %v941_v25 = vpop.eup %940  ;;  %946 = vpow2.f32 %v718_v21 }
 0x108   :  { %753 = vst.msk [vmem:[%s1432_s7] sm:$0xff] %vm752_vm2, %v941_v25  ;;  %v649_v26 = vpop.f32.mrb[8].mxu1 }
 0x109   :  { %v943_v27 = vpop.eup %942  ;;  %v650_v28 = vadd.f32 %v1218_v59, %v649_v26  ;;  %v651_v29 = vpop.f32.mrb[9].mxu1 }
 0x10a   :  { %754 = vst.msk [vmem:[%s1432_s7 + $0x8] sm:$0xff] %vm752_vm2, %v943_v27  ;;  %v652_v30 = vpop.f32.mrb[10].mxu1  ;;  %v296_v34 = vpop.f32.mrb[8].mxu0 }
 0x10b   :  { %v720_v31 = vmul.f32 1.442695, %v650_v28  ;;  %v653_v32 = vadd.f32 %v1218_v59, %v652_v30  ;;  %v654_v33 = vpop.f32.mrb[11].mxu1  ;;  %v297_v35 = vadd.f32 %v1224_v63, %v296_v34  ;;  %v298_v36 = vpop.f32.mrb[9].mxu0 }
 0x10c   :  { %v299_v38 = vpop.f32.mrb[10].mxu0 }
 0x10d   :  { %948 = vpow2.f32 %v720_v31  ;;  %v722_v37 = vmul.f32 1.442695, %v653_v32  ;;  %364 = vst.msk [vmem:[%s1431_s6 + $0x20] sm:$0xff] %vm359_vm1, %v297_v35  ;;  %v300_v39 = vadd.f32 %v1224_v63, %v299_v38  ;;  %v301_v40 = vpop.f32.mrb[11].mxu0 }
 0x10f   :  { %v945_v41 = vpop.eup %944  ;;  %950 = vpow2.f32 %v722_v37  ;;  %365 = vst.msk [vmem:[%s1431_s6 + $0x28] sm:$0xff] %vm359_vm1, %v300_v39 }
 0x110   :  { %755 = vst.msk [vmem:[%s1432_s7 + $0x10] sm:$0xff] %vm752_vm2, %v945_v41  ;;  %v657_v42 = vpop.f32.mrb[12].mxu1 }
 0x111   :  { %v947_v43 = vpop.eup %946  ;;  %v658_v44 = vadd.f32 %v1218_v59, %v657_v42  ;;  %v659_v45 = vpop.f32.mrb[13].mxu1 }
 0x112   :  { %756 = vst.msk [vmem:[%s1432_s7 + $0x18] sm:$0xff] %vm752_vm2, %v947_v43  ;;  %v660_v46 = vpop.f32.mrb[14].mxu1  ;;  %v304_v50 = vpop.f32.mrb[12].mxu0 }
 0x113   :  { %v724_v47 = vmul.f32 1.442695, %v658_v44  ;;  %v661_v48 = vadd.f32 %v1218_v59, %v660_v46  ;;  %v662_v49 = vpop.f32.mrb[15].mxu1  ;;  %v305_v51 = vadd.f32 %v1224_v63, %v304_v50  ;;  %v306_v52 = vpop.f32.mrb[13].mxu0 }
 0x114   :  { %v307_v54 = vpop.f32.mrb[14].mxu0 }
 0x115   :  { %952 = vpow2.f32 %v724_v47  ;;  %v726_v53 = vmul.f32 1.442695, %v661_v48  ;;  %366 = vst.msk [vmem:[%s1431_s6 + $0x30] sm:$0xff] %vm359_vm1, %v305_v51  ;;  %v308_v55 = vadd.f32 %v1224_v63, %v307_v54  ;;  %v309_v56 = vpop.f32.mrb[15].mxu0 }
 0x117   :  { %v949_v57 = vpop.eup %948  ;;  %954 = vpow2.f32 %v726_v53  ;;  %367 = vst.msk [vmem:[%s1431_s6 + $0x38] sm:$0xff] %vm359_vm1, %v308_v55 }
 0x118   :  { %757 = vst.msk [vmem:[%s1432_s7 + $0x20] sm:$0xff] %vm752_vm2, %v949_v57  ;;  %v665_v58 = vpop.f32.mrb[16].mxu1 }
 0x119   :  { %v951_v60 = vpop.eup %950  ;;  %v666_v61 = vadd.f32 %v1218_v59, %v665_v58  ;;  %v667_v62 = vpop.f32.mrb[17].mxu1 }
 0x11a   :  { %758 = vst.msk [vmem:[%s1432_s7 + $0x28] sm:$0xff] %vm752_vm2, %v951_v60  ;;  %v668_v0 = vpop.f32.mrb[18].mxu1  ;;  %v312_v4 = vpop.f32.mrb[16].mxu0 }
 0x11b   :  { %v728_v1 = vmul.f32 1.442695, %v666_v61  ;;  %v669_v2 = vadd.f32 %v1218_v59, %v668_v0  ;;  %v670_v3 = vpop.f32.mrb[19].mxu1  ;;  %v313_v5 = vadd.f32 %v1224_v63, %v312_v4  ;;  %v314_v6 = vpop.f32.mrb[17].mxu0 }
 0x11c   :  { %v315_v8 = vpop.f32.mrb[18].mxu0 }
 0x11d   :  { %956 = vpow2.f32 %v728_v1  ;;  %v730_v7 = vmul.f32 1.442695, %v669_v2  ;;  %368 = vst.msk [vmem:[%s1431_s6 + $0x40] sm:$0xff] %vm359_vm1, %v313_v5  ;;  %v316_v9 = vadd.f32 %v1224_v63, %v315_v8  ;;  %v317_v10 = vpop.f32.mrb[19].mxu0 }
 0x11f   :  { %v953_v11 = vpop.eup %952  ;;  %958 = vpow2.f32 %v730_v7  ;;  %369 = vst.msk [vmem:[%s1431_s6 + $0x48] sm:$0xff] %vm359_vm1, %v316_v9 }
 0x120   :  { %759 = vst.msk [vmem:[%s1432_s7 + $0x30] sm:$0xff] %vm752_vm2, %v953_v11  ;;  %v673_v12 = vpop.f32.mrb[20].mxu1 }
 0x121   :  { %v955_v13 = vpop.eup %954  ;;  %v674_v14 = vadd.f32 %v1218_v59, %v673_v12  ;;  %v675_v15 = vpop.f32.mrb[21].mxu1 }
 0x122   :  { %760 = vst.msk [vmem:[%s1432_s7 + $0x38] sm:$0xff] %vm752_vm2, %v955_v13  ;;  %v676_v16 = vpop.f32.mrb[22].mxu1  ;;  %v320_v20 = vpop.f32.mrb[20].mxu0 }
 0x123   :  { %v732_v17 = vmul.f32 1.442695, %v674_v14  ;;  %v677_v18 = vadd.f32 %v1218_v59, %v676_v16  ;;  %v678_v19 = vpop.f32.mrb[23].mxu1  ;;  %v321_v21 = vadd.f32 %v1224_v63, %v320_v20  ;;  %v322_v22 = vpop.f32.mrb[21].mxu0 }
 0x124   :  { %v323_v24 = vpop.f32.mrb[22].mxu0 }
 0x125   :  { %960 = vpow2.f32 %v732_v17  ;;  %v734_v23 = vmul.f32 1.442695, %v677_v18  ;;  %370 = vst.msk [vmem:[%s1431_s6 + $0x50] sm:$0xff] %vm359_vm1, %v321_v21  ;;  %v324_v25 = vadd.f32 %v1224_v63, %v323_v24  ;;  %v325_v26 = vpop.f32.mrb[23].mxu0 }
 0x127   :  { %v957_v27 = vpop.eup %956  ;;  %962 = vpow2.f32 %v734_v23  ;;  %371 = vst.msk [vmem:[%s1431_s6 + $0x58] sm:$0xff] %vm359_vm1, %v324_v25 }
 0x128   :  { %761 = vst.msk [vmem:[%s1432_s7 + $0x40] sm:$0xff] %vm752_vm2, %v957_v27  ;;  %v681_v28 = vpop.f32.mrb[24].mxu1 }
 0x129   :  { %v959_v29 = vpop.eup %958  ;;  %v682_v30 = vadd.f32 %v1218_v59, %v681_v28  ;;  %v683_v31 = vpop.f32.mrb[25].mxu1 }
 0x12a   :  { %762 = vst.msk [vmem:[%s1432_s7 + $0x48] sm:$0xff] %vm752_vm2, %v959_v29  ;;  %v684_v32 = vpop.f32.mrb[26].mxu1  ;;  %v328_v36 = vpop.f32.mrb[24].mxu0 }
 0x12b   :  { %v736_v33 = vmul.f32 1.442695, %v682_v30  ;;  %v685_v34 = vadd.f32 %v1218_v59, %v684_v32  ;;  %v686_v35 = vpop.f32.mrb[27].mxu1  ;;  %v329_v37 = vadd.f32 %v1224_v63, %v328_v36  ;;  %v330_v38 = vpop.f32.mrb[25].mxu0 }
 0x12c   :  { %v331_v40 = vpop.f32.mrb[26].mxu0 }
 0x12d   :  { %964 = vpow2.f32 %v736_v33  ;;  %v738_v39 = vmul.f32 1.442695, %v685_v34  ;;  %372 = vst.msk [vmem:[%s1431_s6 + $0x60] sm:$0xff] %vm359_vm1, %v329_v37  ;;  %v332_v41 = vadd.f32 %v1224_v63, %v331_v40  ;;  %v333_v42 = vpop.f32.mrb[27].mxu0 }
 0x12f   :  { %v961_v43 = vpop.eup %960  ;;  %966 = vpow2.f32 %v738_v39  ;;  %373 = vst.msk [vmem:[%s1431_s6 + $0x68] sm:$0xff] %vm359_vm1, %v332_v41 }
 0x130   :  { %763 = vst.msk [vmem:[%s1432_s7 + $0x50] sm:$0xff] %vm752_vm2, %v961_v43  ;;  %v689_v44 = vpop.f32.mrb[28].mxu1 }
 0x131   :  { %v963_v45 = vpop.eup %962  ;;  %v690_v46 = vadd.f32 %v1218_v59, %v689_v44  ;;  %v691_v47 = vpop.f32.mrb[29].mxu1 }
 0x132   :  { %764 = vst.msk [vmem:[%s1432_s7 + $0x58] sm:$0xff] %vm752_vm2, %v963_v45  ;;  %v692_v48 = vpop.f32.mrb[30].mxu1  ;;  %v336_v52 = vpop.f32.mrb[28].mxu0 }
 0x133   :  { %v740_v49 = vmul.f32 1.442695, %v690_v46  ;;  %v693_v50 = vadd.f32 %v1218_v59, %v692_v48  ;;  %v694_v51 = vpop.f32.mrb[31].mxu1  ;;  %v337_v53 = vadd.f32 %v1224_v63, %v336_v52  ;;  %v338_v54 = vpop.f32.mrb[29].mxu0 }
 0x134   :  { %v339_v56 = vpop.f32.mrb[30].mxu0 }
 0x135   :  { %968 = vpow2.f32 %v740_v49  ;;  %v742_v55 = vmul.f32 1.442695, %v693_v50  ;;  %374 = vst.msk [vmem:[%s1431_s6 + $0x70] sm:$0xff] %vm359_vm1, %v337_v53  ;;  %v340_v57 = vadd.f32 %v1224_v63, %v339_v56  ;;  %v341_v58 = vpop.f32.mrb[31].mxu0 }
 0x137   :  { %v965_v60 = vpop.eup %964  ;;  %970 = vpow2.f32 %v742_v55  ;;  %375 = vst.msk [vmem:[%s1431_s6 + $0x78] sm:$0xff] %vm359_vm1, %v340_v57 }
 0x138   :  { %765 = vst.msk [vmem:[%s1432_s7 + $0x60] sm:$0xff] %vm752_vm2, %v965_v60  ;;  %v697_v61 = vpop.f32.mrb[32].mxu1 }
 0x139   :  { %v967_v62 = vpop.eup %966  ;;  %v698_v0 = vadd.f32 %v1218_v59, %v697_v61  ;;  %v699_v1 = vpop.f32.mrb[33].mxu1 }
 0x13a   :  { %766 = vst.msk [vmem:[%s1432_s7 + $0x68] sm:$0xff] %vm752_vm2, %v967_v62  ;;  %v700_v2 = vpop.f32.mrb[34].mxu1  ;;  %v344_v6 = vpop.f32.mrb[32].mxu0 }
 0x13b   :  { %v744_v3 = vmul.f32 1.442695, %v698_v0  ;;  %v701_v4 = vadd.f32 %v1218_v59, %v700_v2  ;;  %v702_v5 = vpop.f32.mrb[35].mxu1  ;;  %v345_v7 = vadd.f32 %v1224_v63, %v344_v6  ;;  %v346_v8 = vpop.f32.mrb[33].mxu0 }
 0x13c   :  { %v347_v10 = vpop.f32.mrb[34].mxu0 }
 0x13d   :  { %972 = vpow2.f32 %v744_v3  ;;  %v746_v9 = vmul.f32 1.442695, %v701_v4  ;;  %376 = vst.msk [vmem:[%s1431_s6 + $0x80] sm:$0xff] %vm359_vm1, %v345_v7  ;;  %v348_v11 = vadd.f32 %v1224_v63, %v347_v10  ;;  %v349_v12 = vpop.f32.mrb[35].mxu0 }
 0x13f   :  { %v969_v13 = vpop.eup %968  ;;  %974 = vpow2.f32 %v746_v9  ;;  %377 = vst.msk [vmem:[%s1431_s6 + $0x88] sm:$0xff] %vm359_vm1, %v348_v11 }
 0x140   :  { %767 = vst.msk [vmem:[%s1432_s7 + $0x70] sm:$0xff] %vm752_vm2, %v969_v13  ;;  %v705_v14 = vpop.f32.mrb[36].mxu1 }
 0x141   :  { %v971_v15 = vpop.eup %970  ;;  %v706_v16 = vadd.f32 %v1218_v59, %v705_v14  ;;  %v707_v17 = vpop.f32.mrb[37].mxu1 }
 0x142   :  { %768 = vst.msk [vmem:[%s1432_s7 + $0x78] sm:$0xff] %vm752_vm2, %v971_v15  ;;  %v708_v18 = vpop.f32.mrb[38].mxu1  ;;  %v352_v22 = vpop.f32.mrb[36].mxu0 }
 0x143   :  { %v748_v19 = vmul.f32 1.442695, %v706_v16  ;;  %v709_v20 = vadd.f32 %v1218_v59, %v708_v18  ;;  %v710_v21 = vpop.f32.mrb[39].mxu1  ;;  %v353_v23 = vadd.f32 %v1224_v63, %v352_v22  ;;  %v354_v24 = vpop.f32.mrb[37].mxu0 }
 0x144   :  { %v355_v26 = vpop.f32.mrb[38].mxu0 }
 0x145   :  { %976 = vpow2.f32 %v748_v19  ;;  %v750_v25 = vmul.f32 1.442695, %v709_v20  ;;  %378 = vst.msk [vmem:[%s1431_s6 + $0x90] sm:$0xff] %vm359_vm1, %v353_v23  ;;  %v356_v27 = vadd.f32 %v1224_v63, %v355_v26  ;;  %v357_v28 = vpop.f32.mrb[39].mxu0 }
 0x147   :  { %v973_v29 = vpop.eup %972  ;;  %978 = vpow2.f32 %v750_v25  ;;  %379 = vst.msk [vmem:[%s1431_s6 + $0x98] sm:$0xff] %vm359_vm1, %v356_v27 }
 0x148   :  { %769 = vst.msk [vmem:[%s1432_s7 + $0x80] sm:$0xff] %vm752_vm2, %v973_v29 }
 0x149   :  { %v975_v59 = vpop.eup %974 }
 0x14a   :  { %770 = vst.msk [vmem:[%s1432_s7 + $0x88] sm:$0xff] %vm752_vm2, %v975_v59 }
 0x14f   :  { %v977_v63 = vpop.eup %976 }
 0x150   :  { %771 = vst.msk [vmem:[%s1432_s7 + $0x90] sm:$0xff] %vm752_vm2, %v977_v63 }
 0x151   :  { %v979_v30 = vpop.eup %978 }
 0x152   :  { %772 = vst.msk [vmem:[%s1432_s7 + $0x98] sm:$0xff] %vm752_vm2, %v979_v30 }

</bundles_post_ra>
